<compile_context>
chip_gen: v7x
topology: tpu7x:2x2x1
jax: 0.10.0
libtpu: 0.0.40
codegen_flags: <defaults>
</compile_context>

<pallas_src>
import jax
import jax.numpy as jnp
from jax.experimental import pallas as pl
from jax.experimental.pallas import tpu as pltpu

COUPLE_SIZE = 1536
H1 = 512
H2 = 256
N_LABELS = 4
OUT_PAD = 128          # lane-dense padded label width
_NEG_BIG = -1.0e30     # bias value for padded label lanes -> softmax prob 0


def _mlp_kernel(x_ref, w1_ref, b1_ref, w2_ref, b2_ref, w3_ref, b3_ref, o_ref):
    # x arrives f32 straight from HBM; cast to bf16 in-kernel (VPU, hidden
    # under the MXU) so the wrapper never makes a separate cast pass.
    x = x_ref[...].astype(jnp.bfloat16)                                # (bt, 1536)

    h = jnp.dot(x, w1_ref[...], preferred_element_type=jnp.float32) + b1_ref[...]
    h = jnp.maximum(h, 0.0).astype(jnp.bfloat16)                       # (bt, 512)

    h = jnp.dot(h, w2_ref[...], preferred_element_type=jnp.float32) + b2_ref[...]
    h = jnp.maximum(h, 0.0).astype(jnp.bfloat16)                       # (bt, 256)

    logits = jnp.dot(h, w3_ref[...], preferred_element_type=jnp.float32) + b3_ref[...]
    # (bt, 128); padded label lanes carry bias -1e30 -> exp underflows to 0.

    m = jnp.max(logits, axis=-1, keepdims=True)
    e = jnp.exp(logits - m)
    s = jnp.sum(e, axis=-1, keepdims=True)
    # Exact divide: rows sum to 1, and softmax is not the bottleneck.
    o_ref[...] = (e / s).astype(o_ref.dtype)


def _round_up(x, m):
    return ((x + m - 1) // m) * m


def _default_batch_tile(B):
    if B <= 128:
        return B  # one tile == full batch extent (always a legal block shape)
    # >= 2 grid steps so v7x's second TensorCore gets work; multiple of 128,
    # capped at 512 to keep per-step VMEM modest while amortizing overhead.
    return min(512, _round_up(pl.cdiv(B, 2), 128))


def patch_classifier(x, params, *, batch_tile=None):
    """x: (B, COUPLE_SIZE) float32 -> (B, N_LABELS) float32 softmax probs."""
    w1, b1, w2, b2, w3, b3 = params
    B, F = x.shape
    assert F == COUPLE_SIZE

    if batch_tile is None:
        batch_tile = _default_batch_tile(B)
    n_tiles = pl.cdiv(B, batch_tile)

    # Pad only the tiny label axis to a lane-dense width (4 -> 128); padded
    # bias lanes get a huge negative value so their softmax probability is 0.
    w3p = jnp.pad(w3, ((0, 0), (0, OUT_PAD - N_LABELS))).astype(jnp.bfloat16)
    b3p = jnp.pad(b3, ((0, 0), (0, OUT_PAD - N_LABELS)), constant_values=_NEG_BIG)

    # Weights as bf16 MXU operands (tiny arrays; accumulation stays f32).
    w1b = w1.astype(jnp.bfloat16)
    w2b = w2.astype(jnp.bfloat16)

    full = lambda i: (0, 0)  # constant block index: weights stay resident
    resident = dict(pipeline_mode=pl.Buffered(1))  # no second pipeline buffer

    out = pl.pallas_call(
        _mlp_kernel,
        out_shape=jax.ShapeDtypeStruct((B, OUT_PAD), jnp.bfloat16),
        grid_spec=pltpu.PrefetchScalarGridSpec(
            num_scalar_prefetch=0,
            grid=(n_tiles,),
            in_specs=[
                pl.BlockSpec((batch_tile, COUPLE_SIZE), lambda i: (i, 0)),
                pl.BlockSpec((COUPLE_SIZE, H1), full, **resident),
                pl.BlockSpec((1, H1), full, **resident),
                pl.BlockSpec((H1, H2), full, **resident),
                pl.BlockSpec((1, H2), full, **resident),
                pl.BlockSpec((H2, OUT_PAD), full, **resident),
                pl.BlockSpec((1, OUT_PAD), full, **resident),
            ],
            out_specs=pl.BlockSpec((batch_tile, OUT_PAD), lambda i: (i, 0)),
        ),
        compiler_params=pltpu.CompilerParams(
            dimension_semantics=("parallel",),
        ),
    )(x, w1b, b1, w2b, b2, w3p, b3p)

    return out[:, :N_LABELS].astype(jnp.float32)


def init_params(key):
    """Deterministic synthetic parameters with the shapes implied by __init__."""
    k1, k2, k3 = jax.random.split(key, 3)
    w1 = jax.random.normal(k1, (COUPLE_SIZE, H1), jnp.float32) * (1.0 / COUPLE_SIZE ** 0.5)
    b1 = jnp.zeros((1, H1), jnp.float32)
    w2 = jax.random.normal(k2, (H1, H2), jnp.float32) * (1.0 / H1 ** 0.5)
    b2 = jnp.zeros((1, H2), jnp.float32)
    w3 = jax.random.normal(k3, (H2, N_LABELS), jnp.float32) * (1.0 / H2 ** 0.5)
    b3 = jnp.zeros((1, N_LABELS), jnp.float32)
    return (w1, b1, w2, b2, w3, b3)


def _reference(x, params):
    w1, b1, w2, b2, w3, b3 = params
    h = jnp.maximum(x @ w1 + b1, 0.0)
    h = jnp.maximum(h @ w2 + b2, 0.0)
    logits = h @ w3 + b3
    return jax.nn.softmax(logits, axis=1)


if __name__ == "__main__":
    key = jax.random.PRNGKey(0)
    k_x, k_x2, k_p = jax.random.split(key, 3)
    params = init_params(k_p)

    # Small-batch check (single tile equal to the batch).
    B = 8
    x = jax.random.normal(k_x, (B, COUPLE_SIZE), jnp.float32)
    out = jax.block_until_ready(patch_classifier(x, params))
    ref = _reference(x, params)
    assert out.shape == (B, N_LABELS)
    # bf16 MXU operands + bf16 output store -> relaxed tolerance on probs.
    assert jnp.allclose(out, ref, atol=2e-2, rtol=0.0)
    assert jnp.allclose(jnp.sum(out, axis=1), 1.0, atol=2e-2)

    # Ragged / multi-tile check: 300 rows -> tile 256, 2 grid steps with a
    # partial last block (no wrapper-side padding of x).
    B2 = 300
    x2 = jax.random.normal(k_x2, (B2, COUPLE_SIZE), jnp.float32)
    out2 = jax.block_until_ready(patch_classifier(x2, params))
    ref2 = _reference(x2, params)
    assert out2.shape == (B2, N_LABELS)
    assert jnp.allclose(out2, ref2, atol=2e-2, rtol=0.0)
    assert jnp.allclose(jnp.sum(out2, axis=1), 1.0, atol=2e-2)

    print("KERNEL_OK")
</pallas_src>

<mosaic_0001>
module attributes {stable_mosaic.version = 11 : i64} {
  func.func @_mlp_kernel(%arg0: i32, %arg1: memref<8x1536xf32, #tpu.memory_space<vmem>>, %arg2: memref<1536x512xbf16, #tpu.memory_space<vmem>>, %arg3: memref<1x512xf32, #tpu.memory_space<vmem>>, %arg4: memref<512x256xbf16, #tpu.memory_space<vmem>>, %arg5: memref<1x256xf32, #tpu.memory_space<vmem>>, %arg6: memref<256x128xbf16, #tpu.memory_space<vmem>>, %arg7: memref<1x128xf32, #tpu.memory_space<vmem>>, %arg8: memref<8x128xbf16, #tpu.memory_space<vmem>>) attributes {dimension_semantics = [#tpu.dimension_semantics<parallel>], iteration_bounds = array<i64: 1>, scalar_prefetch = 0 : i64, scratch_operands = 0 : i64, tpu.core_type = #tpu.core_type<tc>, window_params = [{transform_indices = @transform_0, window_bounds = array<i64: 8, 1536>}, {pipeline_mode = #tpu.pipeline_mode<synchronous>, transform_indices = @transform_1, window_bounds = array<i64: 1536, 512>}, {pipeline_mode = #tpu.pipeline_mode<synchronous>, transform_indices = @transform_2, window_bounds = array<i64: 1, 512>}, {pipeline_mode = #tpu.pipeline_mode<synchronous>, transform_indices = @transform_3, window_bounds = array<i64: 512, 256>}, {pipeline_mode = #tpu.pipeline_mode<synchronous>, transform_indices = @transform_4, window_bounds = array<i64: 1, 256>}, {pipeline_mode = #tpu.pipeline_mode<synchronous>, transform_indices = @transform_5, window_bounds = array<i64: 256, 128>}, {pipeline_mode = #tpu.pipeline_mode<synchronous>, transform_indices = @transform_6, window_bounds = array<i64: 1, 128>}, {transform_indices = @transform_7, window_bounds = array<i64: 8, 128>}]} {
    %c0 = arith.constant 0 : index
    %c0_0 = arith.constant 0 : index
    %0 = vector.load %arg1[%c0, %c0_0] : memref<8x1536xf32, #tpu.memory_space<vmem>>, vector<8x1536xf32>
    %1 = arith.truncf %0 : vector<8x1536xf32> to vector<8x1536xbf16>
    %c0_1 = arith.constant 0 : index
    %c0_2 = arith.constant 0 : index
    %2 = vector.load %arg2[%c0_1, %c0_2] : memref<1536x512xbf16, #tpu.memory_space<vmem>>, vector<1536x512xbf16>
    %cst = arith.constant dense<0.000000e+00> : vector<8x512xf32>
    %3 = tpu.matmul %1, %2, %cst {dimension_numbers = #tpu.dot_dimension_numbers<[1], [0], [0], [1], [0, 0, 1, 1], [], []>} : vector<8x1536xbf16>, vector<1536x512xbf16>, vector<8x512xf32> -> vector<8x512xf32>
    %c0_3 = arith.constant 0 : index
    %c0_4 = arith.constant 0 : index
    %4 = vector.load %arg3[%c0_3, %c0_4] : memref<1x512xf32, #tpu.memory_space<vmem>>, vector<1x512xf32>
    %5 = vector.broadcast %4 : vector<1x512xf32> to vector<8x512xf32>
    %6 = arith.addf %3, %5 : vector<8x512xf32>
    %cst_5 = arith.constant 0.000000e+00 : f32
    %7 = vector.broadcast %cst_5 : f32 to vector<8x512xf32>
    %8 = arith.maximumf %6, %7 : vector<8x512xf32>
    %9 = arith.truncf %8 : vector<8x512xf32> to vector<8x512xbf16>
    %c0_6 = arith.constant 0 : index
    %c0_7 = arith.constant 0 : index
    %10 = vector.load %arg4[%c0_6, %c0_7] : memref<512x256xbf16, #tpu.memory_space<vmem>>, vector<512x256xbf16>
    %cst_8 = arith.constant dense<0.000000e+00> : vector<8x256xf32>
    %11 = tpu.matmul %9, %10, %cst_8 {dimension_numbers = #tpu.dot_dimension_numbers<[1], [0], [0], [1], [0, 0, 1, 1], [], []>} : vector<8x512xbf16>, vector<512x256xbf16>, vector<8x256xf32> -> vector<8x256xf32>
    %c0_9 = arith.constant 0 : index
    %c0_10 = arith.constant 0 : index
    %12 = vector.load %arg5[%c0_9, %c0_10] : memref<1x256xf32, #tpu.memory_space<vmem>>, vector<1x256xf32>
    %13 = vector.broadcast %12 : vector<1x256xf32> to vector<8x256xf32>
    %14 = arith.addf %11, %13 : vector<8x256xf32>
    %cst_11 = arith.constant 0.000000e+00 : f32
    %15 = vector.broadcast %cst_11 : f32 to vector<8x256xf32>
    %16 = arith.maximumf %14, %15 : vector<8x256xf32>
    %17 = arith.truncf %16 : vector<8x256xf32> to vector<8x256xbf16>
    %c0_12 = arith.constant 0 : index
    %c0_13 = arith.constant 0 : index
    %18 = vector.load %arg6[%c0_12, %c0_13] : memref<256x128xbf16, #tpu.memory_space<vmem>>, vector<256x128xbf16>
    %cst_14 = arith.constant dense<0.000000e+00> : vector<8x128xf32>
    %19 = tpu.matmul %17, %18, %cst_14 {dimension_numbers = #tpu.dot_dimension_numbers<[1], [0], [0], [1], [0, 0, 1, 1], [], []>} : vector<8x256xbf16>, vector<256x128xbf16>, vector<8x128xf32> -> vector<8x128xf32>
    %c0_15 = arith.constant 0 : index
    %c0_16 = arith.constant 0 : index
    %20 = vector.load %arg7[%c0_15, %c0_16] : memref<1x128xf32, #tpu.memory_space<vmem>>, vector<1x128xf32>
    %21 = vector.broadcast %20 : vector<1x128xf32> to vector<8x128xf32>
    %22 = arith.addf %19, %21 : vector<8x128xf32>
    %cst_17 = arith.constant dense<0xFF800000> : vector<8xf32>
    %23 = vector.multi_reduction <maximumf>, %22, %cst_17 [1] : vector<8x128xf32> to vector<8xf32>
    %24 = vector.shape_cast %23 : vector<8xf32> to vector<8x1xf32>
    %25 = vector.broadcast %24 : vector<8x1xf32> to vector<8x128xf32>
    %26 = arith.subf %22, %25 : vector<8x128xf32>
    %27 = math.exp %26 : vector<8x128xf32>
    %cst_18 = arith.constant dense<0.000000e+00> : vector<8xf32>
    %28 = vector.multi_reduction <add>, %27, %cst_18 [1] : vector<8x128xf32> to vector<8xf32>
    %29 = vector.shape_cast %28 : vector<8xf32> to vector<8x1xf32>
    %30 = vector.broadcast %29 : vector<8x1xf32> to vector<8x128xf32>
    %31 = arith.divf %27, %30 : vector<8x128xf32>
    %32 = arith.truncf %31 : vector<8x128xf32> to vector<8x128xbf16>
    %c0_19 = arith.constant 0 : index
    %c0_20 = arith.constant 0 : index
    %33 = vector.load %arg8[%c0_19, %c0_20] : memref<8x128xbf16, #tpu.memory_space<vmem>>, vector<8x128xbf16>
    tpu.vector_store %arg8[%c0_19, %c0_20], %32 {strides = array<i32>} : memref<8x128xbf16, #tpu.memory_space<vmem>>, vector<8x128xbf16>,
    return
  }
  func.func @transform_0(%arg0: i32) -> (i32, i32) {
    %c0_i32 = arith.constant 0 : i32
    %c0_i32_0 = arith.constant 0 : i32
    return %arg0, %c0_i32 : i32, i32
  }
  func.func @transform_1(%arg0: i32) -> (i32, i32) {
    %c0_i32 = arith.constant 0 : i32
    %c0_i32_0 = arith.constant 0 : i32
    %c0_i32_1 = arith.constant 0 : i32
    return %c0_i32, %c0_i32_0 : i32, i32
  }
  func.func @transform_2(%arg0: i32) -> (i32, i32) {
    %c0_i32 = arith.constant 0 : i32
    %c0_i32_0 = arith.constant 0 : i32
    %c0_i32_1 = arith.constant 0 : i32
    return %c0_i32, %c0_i32_0 : i32, i32
  }
  func.func @transform_3(%arg0: i32) -> (i32, i32) {
    %c0_i32 = arith.constant 0 : i32
    %c0_i32_0 = arith.constant 0 : i32
    %c0_i32_1 = arith.constant 0 : i32
    return %c0_i32, %c0_i32_0 : i32, i32
  }
  func.func @transform_4(%arg0: i32) -> (i32, i32) {
    %c0_i32 = arith.constant 0 : i32
    %c0_i32_0 = arith.constant 0 : i32
    %c0_i32_1 = arith.constant 0 : i32
    return %c0_i32, %c0_i32_0 : i32, i32
  }
  func.func @transform_5(%arg0: i32) -> (i32, i32) {
    %c0_i32 = arith.constant 0 : i32
    %c0_i32_0 = arith.constant 0 : i32
    %c0_i32_1 = arith.constant 0 : i32
    return %c0_i32, %c0_i32_0 : i32, i32
  }
  func.func @transform_6(%arg0: i32) -> (i32, i32) {
    %c0_i32 = arith.constant 0 : i32
    %c0_i32_0 = arith.constant 0 : i32
    %c0_i32_1 = arith.constant 0 : i32
    return %c0_i32, %c0_i32_0 : i32, i32
  }
  func.func @transform_7(%arg0: i32) -> (i32, i32) {
    %c0_i32 = arith.constant 0 : i32
    %c0_i32_0 = arith.constant 0 : i32
    return %arg0, %c0_i32 : i32, i32
  }
}

</mosaic_0001>

<bundles_post_ra>
// kernel: tpu_custom_call.1
= control target key start
LH: loop header
LB: loop body
LE: loop exit
PB: predicated region body
PF: predicated region fallthrough
CT: control target
= control target key end

     0   :  { %12 = vsyncpa [#allocation3], 0  ;;  %s5302_s0 = inlined_call_operand.hbm [shape: f32[8,1536], index: 0, kind: input, shape index: {}]   ;;  %s5303_s1 = inlined_call_operand.hbm [shape: bf16[1536,512], index: 1, kind: input, shape index: {}]   ;;  %s5304_s2 = inlined_call_operand.hbm [shape: f32[1,512], index: 2, kind: input, shape index: {}]   ;;  %s5305_s3 = inlined_call_operand.hbm [shape: bf16[512,256], index: 3, kind: input, shape index: {}]   ;;  %s5306_s4 = inlined_call_operand.hbm [shape: f32[1,256], index: 4, kind: input, shape index: {}]   ;;  %s5307_s5 = inlined_call_operand.hbm [shape: bf16[256,128], index: 5, kind: input, shape index: {}]   ;;  %s5308_s6 = inlined_call_operand.hbm [shape: f32[1,128], index: 6, kind: input, shape index: {}]   ;;  %s5309_s7 = inlined_call_operand.hbm [shape: bf16[8,128], index: 7, kind: output, shape index: {}]  }
   0x1   :  { %13 = vsyncpa [#allocation6], 0 }
   0x2   :  { %14 = vsyncpa [#allocation9], 0 }
   0x3   :  { %15 = vsyncpa [#allocation12], 0 }
   0x4   :  { %16 = vsyncpa [#allocation4], 0  ;;  %s5078_s24 = smov [#allocation5]   ;;  %s4892_s28 = scalar_lea.hbm %s5303_s1, 49152 }
   0x5   :  { %s32_s25 = sshll.u32 %s5078_s24, 4  ;;  %p4893_p0 = scmp.ne.s32.totalorder %s5303_s1, %s4892_s28  ;;  %s33_s25 = int_to_ptr.vmem [resolvable:$true] %s32_s25 }
   0x6   :  { %p4896_p1 = scmp.lt.u32.totalorder %s4892_s28, %s5303_s1 }
   0x8   :  { %p4898_p2 = pnand %p4896_p1, %p4893_p0 }
   0xa   :  { %4901 = shalt.err (!%p4898_p2)
}
   0xb   :  { %s4902_s10 = scalar_lea.vmem %s33_s25, 49152  ;;  %p4907_p4 = scmp.lt.s32.totalorder %s33_s25, %s33_s25 }
   0xc   :  { %p4903_p3 = scmp.ne.s32.totalorder %s33_s25, %s4902_s10  ;;  %p4908_p5 = scmp.lt.s32.totalorder %s4902_s10, %s4902_s10 }
   0xe   :  { %p4909_p6 = por %p4908_p5, %p4907_p4 }
  0x10   :  { %p4910_p7 = pnand %p4909_p6, %p4903_p3 }
  0x12   :  { %4913 = shalt.err (!%p4910_p7)
}
  0x13   :  { %s5079_s11 = smov 256   ;;  %s5080_s12 = smov 16  }
  0x14   :  { %38 = dma.hbm_to_vmem [thread:$0]  %s5303_s1, 49152, %s33_s25, [#allocation6], %s5079_s11, %s5079_s11, %s5080_s12  }
  0x15   :  { %s5081_s15 = smov [#allocation8]   ;;  %s4914_s19 = scalar_lea.hbm %s5305_s3, 8192 }
  0x16   :  { %s54_s16 = sshll.u32 %s5081_s15, 4  ;;  %p4915_p8 = scmp.ne.s32.totalorder %s5305_s3, %s4914_s19  ;;  %s55_s16 = int_to_ptr.vmem [resolvable:$true] %s54_s16 }
  0x17   :  { %p4918_p9 = scmp.lt.u32.totalorder %s4914_s19, %s5305_s3 }
  0x19   :  { %p4920_p10 = pnand %p4918_p9, %p4915_p8 }
  0x1b   :  { %4923 = shalt.err (!%p4920_p10)
}
  0x1c   :  { %s4924_s24 = scalar_lea.vmem %s55_s16, 8192  ;;  %p4929_p12 = scmp.lt.s32.totalorder %s55_s16, %s55_s16 }
  0x1d   :  { %p4925_p11 = scmp.ne.s32.totalorder %s55_s16, %s4924_s24  ;;  %p4930_p13 = scmp.lt.s32.totalorder %s4924_s24, %s4924_s24 }
  0x1f   :  { %p4931_p0 = por %p4930_p13, %p4929_p12 }
  0x21   :  { %p4932_p1 = pnand %p4931_p0, %p4925_p11 }
  0x23   :  { %4935 = shalt.err (!%p4932_p1)
}
  0x24   :  { %s5082_s1 = smov 128   ;;  %s5083_s25 = smov 8  }
  0x25   :  { %60 = dma.hbm_to_vmem [thread:$0]  %s5305_s3, 8192, %s55_s16, [#allocation9], %s5082_s1, %s5082_s1, %s5083_s25  }
  0x26   :  { %s5084_s28 = smov [#allocation11]   ;;  %s4936_s9 = scalar_lea.hbm %s5307_s5, 2048 }
  0x27   :  { %s76_s29 = sshll.u32 %s5084_s28, 4  ;;  %p4937_p2 = scmp.ne.s32.totalorder %s5307_s5, %s4936_s9  ;;  %s77_s29 = int_to_ptr.vmem [resolvable:$true] %s76_s29 }
  0x28   :  { %p4940_p3 = scmp.lt.u32.totalorder %s4936_s9, %s5307_s5 }
  0x2a   :  { %p4942_p4 = pnand %p4940_p3, %p4937_p2 }
  0x2c   :  { %4945 = shalt.err (!%p4942_p4)
}
  0x2d   :  { %s4946_s14 = scalar_lea.vmem %s77_s29, 2048  ;;  %p4951_p6 = scmp.lt.s32.totalorder %s77_s29, %s77_s29 }
  0x2e   :  { %p4947_p5 = scmp.ne.s32.totalorder %s77_s29, %s4946_s14  ;;  %p4952_p7 = scmp.lt.s32.totalorder %s4946_s14, %s4946_s14 }
  0x30   :  { %p4953_p8 = por %p4952_p7, %p4951_p6 }
  0x32   :  { %p4954_p9 = pnand %p4953_p8, %p4947_p5 }
  0x34   :  { %4957 = shalt.err (!%p4954_p9)
}
  0x35   :  { %s5085_s3 = smov 64   ;;  %s5086_s15 = smov 4  }
  0x36   :  { %82 = dma.hbm_to_vmem [thread:$0]  %s5307_s5, 2048, %s77_s29, [#allocation12], %s5085_s3, %s5085_s3, %s5086_s15  }
  0x37   :  { %s5087_s18 = smov [#allocation2]   ;;  %s5088_s20 = smov [#allocation7]  }
  0x38   :  { %s23_s19 = sshll.u32 %s5087_s18, 4  ;;  %s45_s21 = sshll.u32 %s5088_s20, 4  ;;  %s24_s19 = int_to_ptr.vmem [resolvable:$true] %s23_s19  ;;  %s46_s21 = int_to_ptr.vmem [resolvable:$true] %s45_s21 }
  0x39   :  { %s4958_s24 = scalar_lea.hbm %s5302_s0, 1536 }
  0x3a   :  { %p4959_p10 = scmp.ne.s32.totalorder %s5302_s0, %s4958_s24  ;;  %p4962_p11 = scmp.lt.u32.totalorder %s4958_s24, %s5302_s0 }
  0x3c   :  { %p4964_p12 = pnand %p4962_p11, %p4959_p10 }
  0x3e   :  { %4967 = shalt.err (!%p4964_p12)
}
  0x3f   :  { %s4968_s5 = scalar_lea.vmem %s24_s19, 1536  ;;  %p4973_p0 = scmp.lt.s32.totalorder %s24_s19, %s24_s19 }
  0x40   :  { %p4969_p13 = scmp.ne.s32.totalorder %s24_s19, %s4968_s5  ;;  %p4974_p1 = scmp.lt.s32.totalorder %s4968_s5, %s4968_s5 }
  0x42   :  { %p4975_p2 = por %p4974_p1, %p4973_p0 }
  0x44   :  { %p4976_p3 = pnand %p4975_p2, %p4969_p13 }
  0x46   :  { %4979 = shalt.err (!%p4976_p3)
}
  0x47   :  { %26 = dma.hbm_to_vmem [thread:$0]  %s5302_s0, 1536, %s24_s19, [#allocation3]  }
  0x48   :  { %s4980_s9 = scalar_lea.hbm %s5304_s2, 64 }
  0x49   :  { %p4981_p4 = scmp.ne.s32.totalorder %s5304_s2, %s4980_s9  ;;  %p4984_p5 = scmp.lt.u32.totalorder %s4980_s9, %s5304_s2 }
  0x4b   :  { %p4986_p6 = pnand %p4984_p5, %p4981_p4 }
  0x4d   :  { %4989 = shalt.err (!%p4986_p6)
}
  0x4e   :  { %s4990_s14 = scalar_lea.vmem %s46_s21, 64  ;;  %p4995_p8 = scmp.lt.s32.totalorder %s46_s21, %s46_s21 }
  0x4f   :  { %p4991_p7 = scmp.ne.s32.totalorder %s46_s21, %s4990_s14  ;;  %p4996_p9 = scmp.lt.s32.totalorder %s4990_s14, %s4990_s14 }
  0x51   :  { %p4997_p10 = por %p4996_p9, %p4995_p8 }
  0x53   :  { %p4998_p11 = pnand %p4997_p10, %p4991_p7 }
  0x55   :  { %5001 = shalt.err (!%p4998_p11)
}
  0x56   :  { %48 = dma.hbm_to_vmem [thread:$0]  %s5304_s2, 64, %s46_s21, [#allocation6]  }
  0x57   :  { %s5089_s15 = smov [#allocation10]   ;;  %s5090_s17 = smov [#allocation13]  }
  0x58   :  { %s67_s16 = sshll.u32 %s5089_s15, 4  ;;  %s89_s18 = sshll.u32 %s5090_s17, 4  ;;  %s68_s16 = int_to_ptr.vmem [resolvable:$true] %s67_s16  ;;  %s90_s18 = int_to_ptr.vmem [resolvable:$true] %s89_s18 }
  0x59   :  { %s5002_s22 = scalar_lea.hbm %s5306_s4, 32 }
  0x5a   :  { %p5003_p12 = scmp.ne.s32.totalorder %s5306_s4, %s5002_s22  ;;  %p5006_p13 = scmp.lt.u32.totalorder %s5002_s22, %s5306_s4 }
  0x5c   :  { %p5008_p0 = pnand %p5006_p13, %p5003_p12 }
  0x5e   :  { %5011 = shalt.err (!%p5008_p0)
}
  0x5f   :  { %s5012_s2 = scalar_lea.vmem %s68_s16, 32  ;;  %p5017_p2 = scmp.lt.s32.totalorder %s68_s16, %s68_s16 }
  0x60   :  { %p5013_p1 = scmp.ne.s32.totalorder %s68_s16, %s5012_s2  ;;  %p5018_p3 = scmp.lt.s32.totalorder %s5012_s2, %s5012_s2 }
  0x62   :  { %p5019_p4 = por %p5018_p3, %p5017_p2 }
  0x64   :  { %p5020_p5 = pnand %p5019_p4, %p5013_p1 }
  0x66   :  { %5023 = shalt.err (!%p5020_p5)
}
  0x67   :  { %70 = dma.hbm_to_vmem [thread:$0]  %s5306_s4, 32, %s68_s16, [#allocation9]  }
  0x68   :  { %s5024_s28 = scalar_lea.hbm %s5308_s6, 16 }
  0x69   :  { %p5025_p6 = scmp.ne.s32.totalorder %s5308_s6, %s5024_s28  ;;  %p5028_p7 = scmp.lt.u32.totalorder %s5024_s28, %s5308_s6 }
  0x6b   :  { %p5030_p8 = pnand %p5028_p7, %p5025_p6 }
  0x6d   :  { %5033 = shalt.err (!%p5030_p8)
}
  0x6e   :  { %s5034_s10 = scalar_lea.vmem %s90_s18, 16  ;;  %s5038_s11 = scalar_lea.vmem %s90_s18, 32 }
  0x6f   :  { %p5035_p9 = scmp.ne.s32.totalorder %s90_s18, %s5034_s10  ;;  %p5039_p10 = scmp.lt.s32.totalorder %s90_s18, %s90_s18 }
  0x70   :  { %p5040_p11 = scmp.lt.s32.totalorder %s5038_s11, %s5034_s10 }
  0x72   :  { %p5041_p12 = por %p5040_p11, %p5039_p10 }
  0x74   :  { %p5042_p13 = pnand %p5041_p12, %p5035_p9 }
  0x76   :  { %5045 = shalt.err (!%p5042_p13)
}
  0x77   :  { %92 = dma.hbm_to_vmem [thread:$0]  %s5308_s6, 16, %s90_s18, [#allocation12]  }
  0x78   :  { %5068 = dma.done.wait [#allocation3], 1536  }
  0x79   :  { %5069 = vsyncadd [#allocation3], 4294965760 }
  0x7a   :  { %5070 = dma.done.wait [#allocation6], 49216  }
  0x7b   :  { %5071 = vsyncadd [#allocation6], 4294918080 }
  0x7c   :  { %5072 = dma.done.wait [#allocation9], 8224  }
  0x7d   :  { %5073 = vsyncadd [#allocation9], 4294959072 }
  0x7e   :  { %5074 = dma.done.wait [#allocation12], 2064  }
  0x7f   :  { %5075 = vsyncadd [#allocation12], 4294965232  ;;  %v4200_v0 = vld [vmem:[#allocation5 + $0x4] ss:$16 sps:$4 sm:$0xff]   ;;  %v4204_v2 = vld [vmem:[#allocation5] ss:$16 sps:$4 sm:$0xff]  }
  0x80   :  { %v4202_v1 = vld [vmem:[#allocation5 + $0x204] ss:$16 sps:$4 sm:$0xff]   ;;  %2465 = vmatprep.subr.bf16.mxu1 %v4200_v0  ;;  %v4205_v3 = vld [vmem:[#allocation5 + $0x200] ss:$16 sps:$4 sm:$0xff]   ;;  %v116_v46 = vld [vmem:[#allocation2 + $0x8] sm:$0xff]  ;;  %s5091_s6 = smov [#allocation14]  }
  0x81   :  { %2506 = vmatprep.subr.bf16.mxu0 %v4202_v1  ;;  %v4206_v4 = vld [vmem:[#allocation5 + $0x24] ss:$16 sps:$4 sm:$0xff]   ;;  %2466 = vmatpush1.bf16.msra.mxu1 %v4204_v2  ;;  %v4210_v6 = vld [vmem:[#allocation5 + $0x20] ss:$16 sps:$4 sm:$0xff]   ;;  %v5216_v48 = vpack.c.bf16 %v116_v46, %v116_v46  ;;  %v118_v49 = vld [vmem:[#allocation2 + $0x18] sm:$0xff]  ;;  %s3639_s13 = sshll.u32 %s5091_s6, 4  ;;  %s3640_s13 = int_to_ptr.vmem [resolvable:$true] %s3639_s13 }
  0x82   :  { %2507 = vmatpush1.bf16.msra.mxu0 %v4205_v3  ;;  %v4208_v5 = vld [vmem:[#allocation5 + $0x224] ss:$16 sps:$4 sm:$0xff]   ;;  %2467 = vmatprep.subr.bf16.mxu1 %v4206_v4  ;;  %v4211_v7 = vld [vmem:[#allocation5 + $0x220] ss:$16 sps:$4 sm:$0xff]   ;;  %v5218_v52 = vpack.c.bf16 %v118_v49, %v118_v49  ;;  %v4353_v49 = vld [vmem:[#allocation5 + $0x128] ss:$16 sps:$4 sm:$0xff]   ;;  %p5051_p1 = scmp.lt.s32.totalorder %s3640_s13, %s3640_s13 }
  0x83   :  { %2508 = vmatprep.subr.bf16.mxu0 %v4208_v5  ;;  %v4212_v8 = vld [vmem:[#allocation5 + $0x44] ss:$16 sps:$4 sm:$0xff]   ;;  %v4216_v10 = vld [vmem:[#allocation5 + $0x40] ss:$16 sps:$4 sm:$0xff]   ;;  %2497 = vmatprep.mubr.bf16.mxu1 %v5216_v48  ;;  %s5046_s14 = scalar_lea.vmem %s3640_s13, 64 }
  0x84   :  { %v4214_v9 = vld [vmem:[#allocation5 + $0x244] ss:$16 sps:$4 sm:$0xff]   ;;  %v4217_v11 = vld [vmem:[#allocation5 + $0x240] ss:$16 sps:$4 sm:$0xff]   ;;  %2538 = vmatprep.mubr.bf16.mxu0 %v5218_v52  ;;  %p5047_p0 = scmp.ne.s32.totalorder %s3640_s13, %s5046_s14  ;;  %p5052_p2 = scmp.lt.s32.totalorder %s5046_s14, %s5046_s14 }
  0x85   :  { %2468 = vmatpush1.bf16.msra.mxu1 %v4210_v6  ;;  %v4218_v12 = vld [vmem:[#allocation5 + $0x64] ss:$16 sps:$4 sm:$0xff]   ;;  %v4222_v14 = vld [vmem:[#allocation5 + $0x60] ss:$16 sps:$4 sm:$0xff]  }
  0x86   :  { %2509 = vmatpush1.bf16.msra.mxu0 %v4211_v7  ;;  %2469 = vmatprep.subr.bf16.mxu1 %v4212_v8  ;;  %v4220_v13 = vld [vmem:[#allocation5 + $0x264] ss:$16 sps:$4 sm:$0xff]   ;;  %v4223_v15 = vld [vmem:[#allocation5 + $0x260] ss:$16 sps:$4 sm:$0xff]   ;;  %v4301_v7 = vld [vmem:[#allocation5 + $0xc] ss:$16 sps:$4 sm:$0xff]   ;;  %p5053_p3 = por %p5052_p2, %p5051_p1 }
  0x87   :  { %2510 = vmatprep.subr.bf16.mxu0 %v4214_v9  ;;  %v4224_v16 = vld [vmem:[#allocation5 + $0x84] ss:$16 sps:$4 sm:$0xff]   ;;  %v4228_v18 = vld [vmem:[#allocation5 + $0x80] ss:$16 sps:$4 sm:$0xff]  }
  0x88   :  { %v4226_v17 = vld [vmem:[#allocation5 + $0x284] ss:$16 sps:$4 sm:$0xff]   ;;  %v4229_v19 = vld [vmem:[#allocation5 + $0x280] ss:$16 sps:$4 sm:$0xff]   ;;  %p5054_p4 = pnand %p5053_p3, %p5047_p0 }
  0x89   :  { %2470 = vmatpush1.bf16.msra.mxu1 %v4216_v10  ;;  %v4230_v20 = vld [vmem:[#allocation5 + $0xa4] ss:$16 sps:$4 sm:$0xff]   ;;  %v4234_v22 = vld [vmem:[#allocation5 + $0xa0] ss:$16 sps:$4 sm:$0xff]   ;;  %v4299_v10 = vld [vmem:[#allocation5 + $0x8] ss:$16 sps:$4 sm:$0xff]  }
  0x8a   :  { %2511 = vmatpush1.bf16.msra.mxu0 %v4217_v11  ;;  %2471 = vmatprep.subr.bf16.mxu1 %v4218_v12  ;;  %v4232_v21 = vld [vmem:[#allocation5 + $0x2a4] ss:$16 sps:$4 sm:$0xff]   ;;  %v4235_v23 = vld [vmem:[#allocation5 + $0x2a0] ss:$16 sps:$4 sm:$0xff]  }
  0x8b   :  { %2512 = vmatprep.subr.bf16.mxu0 %v4220_v13  ;;  %v4236_v24 = vld [vmem:[#allocation5 + $0xc4] ss:$16 sps:$4 sm:$0xff]   ;;  %v4240_v26 = vld [vmem:[#allocation5 + $0xc0] ss:$16 sps:$4 sm:$0xff]   ;;  %v4307_v13 = vld [vmem:[#allocation5 + $0x2c] ss:$16 sps:$4 sm:$0xff]  }
  0x8c   :  { %v4238_v25 = vld [vmem:[#allocation5 + $0x2c4] ss:$16 sps:$4 sm:$0xff]   ;;  %v4241_v27 = vld [vmem:[#allocation5 + $0x2c0] ss:$16 sps:$4 sm:$0xff]  }
  0x8d   :  { %2472 = vmatpush1.bf16.msra.mxu1 %v4222_v14  ;;  %v4242_v28 = vld [vmem:[#allocation5 + $0xe4] ss:$16 sps:$4 sm:$0xff]   ;;  %v4246_v30 = vld [vmem:[#allocation5 + $0xe0] ss:$16 sps:$4 sm:$0xff]  }
  0x8e   :  { %2513 = vmatpush1.bf16.msra.mxu0 %v4223_v15  ;;  %2473 = vmatprep.subr.bf16.mxu1 %v4224_v16  ;;  %v4244_v29 = vld [vmem:[#allocation5 + $0x2e4] ss:$16 sps:$4 sm:$0xff]   ;;  %v4247_v31 = vld [vmem:[#allocation5 + $0x2e0] ss:$16 sps:$4 sm:$0xff]   ;;  %v4305_v15 = vld [vmem:[#allocation5 + $0x28] ss:$16 sps:$4 sm:$0xff]  }
  0x8f   :  { %2514 = vmatprep.subr.bf16.mxu0 %v4226_v17  ;;  %v4248_v32 = vld [vmem:[#allocation5 + $0x104] ss:$16 sps:$4 sm:$0xff]   ;;  %v4252_v34 = vld [vmem:[#allocation5 + $0x100] ss:$16 sps:$4 sm:$0xff]   ;;  %v4313_v17 = vld [vmem:[#allocation5 + $0x4c] ss:$16 sps:$4 sm:$0xff]  }
  0x90   :  { %v4250_v33 = vld [vmem:[#allocation5 + $0x304] ss:$16 sps:$4 sm:$0xff]   ;;  %v4253_v35 = vld [vmem:[#allocation5 + $0x300] ss:$16 sps:$4 sm:$0xff]  }
  0x91   :  { %2474 = vmatpush1.bf16.msra.mxu1 %v4228_v18  ;;  %v4254_v36 = vld [vmem:[#allocation5 + $0x124] ss:$16 sps:$4 sm:$0xff]   ;;  %v4258_v38 = vld [vmem:[#allocation5 + $0x120] ss:$16 sps:$4 sm:$0xff]  }
  0x92   :  { %2515 = vmatpush1.bf16.msra.mxu0 %v4229_v19  ;;  %2475 = vmatprep.subr.bf16.mxu1 %v4230_v20  ;;  %v4256_v37 = vld [vmem:[#allocation5 + $0x324] ss:$16 sps:$4 sm:$0xff]   ;;  %v4259_v39 = vld [vmem:[#allocation5 + $0x320] ss:$16 sps:$4 sm:$0xff]   ;;  %v4311_v19 = vld [vmem:[#allocation5 + $0x48] ss:$16 sps:$4 sm:$0xff]  }
  0x93   :  { %2516 = vmatprep.subr.bf16.mxu0 %v4232_v21  ;;  %v4260_v40 = vld [vmem:[#allocation5 + $0x144] ss:$16 sps:$4 sm:$0xff]   ;;  %v4264_v42 = vld [vmem:[#allocation5 + $0x140] ss:$16 sps:$4 sm:$0xff]   ;;  %v4319_v21 = vld [vmem:[#allocation5 + $0x6c] ss:$16 sps:$4 sm:$0xff]  }
  0x94   :  { %v4262_v41 = vld [vmem:[#allocation5 + $0x344] ss:$16 sps:$4 sm:$0xff]   ;;  %v4265_v43 = vld [vmem:[#allocation5 + $0x340] ss:$16 sps:$4 sm:$0xff]  }
  0x95   :  { %2476 = vmatpush1.bf16.msra.mxu1 %v4234_v22  ;;  %v4266_v44 = vld [vmem:[#allocation5 + $0x164] ss:$16 sps:$4 sm:$0xff]   ;;  %v4270_v47 = vld [vmem:[#allocation5 + $0x160] ss:$16 sps:$4 sm:$0xff]  }
  0x96   :  { %2517 = vmatpush1.bf16.msra.mxu0 %v4235_v23  ;;  %2477 = vmatprep.subr.bf16.mxu1 %v4236_v24  ;;  %v4268_v45 = vld [vmem:[#allocation5 + $0x364] ss:$16 sps:$4 sm:$0xff]   ;;  %v4271_v50 = vld [vmem:[#allocation5 + $0x360] ss:$16 sps:$4 sm:$0xff]   ;;  %v4317_v23 = vld [vmem:[#allocation5 + $0x68] ss:$16 sps:$4 sm:$0xff]  }
  0x97   :  { %2518 = vmatprep.subr.bf16.mxu0 %v4238_v25  ;;  %v4272_v51 = vld [vmem:[#allocation5 + $0x184] ss:$16 sps:$4 sm:$0xff]   ;;  %v4276_v54 = vld [vmem:[#allocation5 + $0x180] ss:$16 sps:$4 sm:$0xff]   ;;  %v4325_v25 = vld [vmem:[#allocation5 + $0x8c] ss:$16 sps:$4 sm:$0xff]  }
  0x98   :  { %v4274_v53 = vld [vmem:[#allocation5 + $0x384] ss:$16 sps:$4 sm:$0xff]   ;;  %v4277_v55 = vld [vmem:[#allocation5 + $0x380] ss:$16 sps:$4 sm:$0xff]  }
  0x99   :  { %2478 = vmatpush1.bf16.msra.mxu1 %v4240_v26  ;;  %v4278_v56 = vld [vmem:[#allocation5 + $0x1a4] ss:$16 sps:$4 sm:$0xff]   ;;  %v4282_v58 = vld [vmem:[#allocation5 + $0x1a0] ss:$16 sps:$4 sm:$0xff]  }
  0x9a   :  { %2519 = vmatpush1.bf16.msra.mxu0 %v4241_v27  ;;  %2479 = vmatprep.subr.bf16.mxu1 %v4242_v28  ;;  %v4280_v57 = vld [vmem:[#allocation5 + $0x3a4] ss:$16 sps:$4 sm:$0xff]   ;;  %v4283_v59 = vld [vmem:[#allocation5 + $0x3a0] ss:$16 sps:$4 sm:$0xff]   ;;  %v4323_v27 = vld [vmem:[#allocation5 + $0x88] ss:$16 sps:$4 sm:$0xff]  }
  0x9b   :  { %2520 = vmatprep.subr.bf16.mxu0 %v4244_v29  ;;  %v4284_v60 = vld [vmem:[#allocation5 + $0x1c4] ss:$16 sps:$4 sm:$0xff]   ;;  %v4288_v62 = vld [vmem:[#allocation5 + $0x1c0] ss:$16 sps:$4 sm:$0xff]   ;;  %v4331_v29 = vld [vmem:[#allocation5 + $0xac] ss:$16 sps:$4 sm:$0xff]  }
  0x9c   :  { %v4286_v61 = vld [vmem:[#allocation5 + $0x3c4] ss:$16 sps:$4 sm:$0xff]   ;;  %v4289_v63 = vld [vmem:[#allocation5 + $0x3c0] ss:$16 sps:$4 sm:$0xff]  }
  0x9d   :  { %2480 = vmatpush1.bf16.msra.mxu1 %v4246_v30  ;;  %v4290_v0 = vld [vmem:[#allocation5 + $0x1e4] ss:$16 sps:$4 sm:$0xff]   ;;  %v4294_v2 = vld [vmem:[#allocation5 + $0x1e0] ss:$16 sps:$4 sm:$0xff]  }
  0x9e   :  { %2521 = vmatpush1.bf16.msra.mxu0 %v4247_v31  ;;  %2481 = vmatprep.subr.bf16.mxu1 %v4248_v32  ;;  %v4292_v1 = vld [vmem:[#allocation5 + $0x3e4] ss:$16 sps:$4 sm:$0xff]   ;;  %v4295_v3 = vld [vmem:[#allocation5 + $0x3e0] ss:$16 sps:$4 sm:$0xff]   ;;  %v4329_v31 = vld [vmem:[#allocation5 + $0xa8] ss:$16 sps:$4 sm:$0xff]  }
  0x9f   :  { %2522 = vmatprep.subr.bf16.mxu0 %v4250_v33  ;;  %v115_v4 = vld [vmem:[#allocation2] sm:$0xff]  ;;  %v117_v6 = vld [vmem:[#allocation2 + $0x10] sm:$0xff]  ;;  %v4337_v33 = vld [vmem:[#allocation5 + $0xcc] ss:$16 sps:$4 sm:$0xff]  }
  0xa0   :  { %v4298_v5 = vld [vmem:[#allocation5 + $0x404] ss:$16 sps:$4 sm:$0xff]   ;;  %v5222_v8 = vpack.c.bf16 %v115_v4, %v115_v4  ;;  %v4296_v9 = vld [vmem:[#allocation5 + $0x400] ss:$16 sps:$4 sm:$0xff]   ;;  %v5224_v11 = vpack.c.bf16 %v117_v6, %v117_v6  ;;  %v4385_v4 = vld [vmem:[#allocation5 + $0x1cc] ss:$16 sps:$4 sm:$0xff]  }
  0xa1   :  { %2482 = vmatpush1.bf16.msra.mxu1 %v4252_v34  ;;  %v4304_v12 = vld [vmem:[#allocation5 + $0x424] ss:$16 sps:$4 sm:$0xff]   ;;  %v4302_v14 = vld [vmem:[#allocation5 + $0x420] ss:$16 sps:$4 sm:$0xff]   ;;  %v120_v34 = vld [vmem:[#allocation2 + $0x28] sm:$0xff] }
  0xa2   :  { %2523 = vmatpush1.bf16.msra.mxu0 %v4253_v35  ;;  %2483 = vmatprep.subr.bf16.mxu1 %v4254_v36  ;;  %v4310_v16 = vld [vmem:[#allocation5 + $0x444] ss:$16 sps:$4 sm:$0xff]   ;;  %v4308_v18 = vld [vmem:[#allocation5 + $0x440] ss:$16 sps:$4 sm:$0xff]   ;;  %v5229_v36 = vpack.c.bf16 %v120_v34, %v120_v34  ;;  %v4383_v6 = vld [vmem:[#allocation5 + $0x1c8] ss:$16 sps:$4 sm:$0xff]  }
  0xa3   :  { %2524 = vmatprep.subr.bf16.mxu0 %v4256_v37  ;;  %v4316_v20 = vld [vmem:[#allocation5 + $0x464] ss:$16 sps:$4 sm:$0xff]   ;;  %v4314_v22 = vld [vmem:[#allocation5 + $0x460] ss:$16 sps:$4 sm:$0xff]   ;;  %v4335_v37 = vld [vmem:[#allocation5 + $0xc8] ss:$16 sps:$4 sm:$0xff]  }
  0xa4   :  { %v4322_v24 = vld [vmem:[#allocation5 + $0x484] ss:$16 sps:$4 sm:$0xff]   ;;  %v4320_v26 = vld [vmem:[#allocation5 + $0x480] ss:$16 sps:$4 sm:$0xff]  }
  0xa5   :  { %2484 = vmatpush1.bf16.msra.mxu1 %v4258_v38  ;;  %v4328_v28 = vld [vmem:[#allocation5 + $0x4a4] ss:$16 sps:$4 sm:$0xff]   ;;  %v4326_v30 = vld [vmem:[#allocation5 + $0x4a0] ss:$16 sps:$4 sm:$0xff]  }
  0xa6   :  { %2525 = vmatpush1.bf16.msra.mxu0 %v4259_v39  ;;  %2485 = vmatprep.subr.bf16.mxu1 %v4260_v40  ;;  %v4334_v32 = vld [vmem:[#allocation5 + $0x4c4] ss:$16 sps:$4 sm:$0xff]   ;;  %v4332_v35 = vld [vmem:[#allocation5 + $0x4c0] ss:$16 sps:$4 sm:$0xff]   ;;  %v4343_v39 = vld [vmem:[#allocation5 + $0xec] ss:$16 sps:$4 sm:$0xff]  }
  0xa7   :  { %2526 = vmatprep.subr.bf16.mxu0 %v4262_v41  ;;  %v4340_v38 = vld [vmem:[#allocation5 + $0x4e4] ss:$16 sps:$4 sm:$0xff]   ;;  %v4338_v40 = vld [vmem:[#allocation5 + $0x4e0] ss:$16 sps:$4 sm:$0xff]   ;;  %v4341_v41 = vld [vmem:[#allocation5 + $0xe8] ss:$16 sps:$4 sm:$0xff]  }
  0xa8   :  { %v4352_v46 = vld [vmem:[#allocation5 + $0x524] ss:$16 sps:$4 sm:$0xff]   ;;  %v4416_v34 = vld [vmem:[#allocation5 + $0x680] ss:$16 sps:$4 sm:$0xff]  }
  0xa9   :  { %2486 = vmatpush1.bf16.msra.mxu1 %v4264_v42  ;;  %v4346_v42 = vld [vmem:[#allocation5 + $0x504] ss:$16 sps:$4 sm:$0xff]  }
  0xaa   :  { %2527 = vmatpush1.bf16.msra.mxu0 %v4265_v43  ;;  %2487 = vmatprep.subr.bf16.mxu1 %v4266_v44  ;;  %v4349_v43 = vld [vmem:[#allocation5 + $0x10c] ss:$16 sps:$4 sm:$0xff]   ;;  %v4344_v44 = vld [vmem:[#allocation5 + $0x500] ss:$16 sps:$4 sm:$0xff]  }
  0xab   :  { %2528 = vmatprep.subr.bf16.mxu0 %v4268_v45  ;;  %v4347_v45 = vld [vmem:[#allocation5 + $0x108] ss:$16 sps:$4 sm:$0xff]  }
  0xad   :  { %2488 = vmatpush1.bf16.msra.mxu1 %v4270_v47  ;;  %v4355_v47 = vld [vmem:[#allocation5 + $0x12c] ss:$16 sps:$4 sm:$0xff]  }
  0xae   :  { %2529 = vmatpush1.bf16.msra.mxu0 %v4271_v50  ;;  %2489 = vmatprep.subr.bf16.mxu1 %v4272_v51  ;;  %v4358_v50 = vld [vmem:[#allocation5 + $0x544] ss:$16 sps:$4 sm:$0xff]   ;;  %v4361_v51 = vld [vmem:[#allocation5 + $0x14c] ss:$16 sps:$4 sm:$0xff]  }
  0xaf   :  { %2530 = vmatprep.subr.bf16.mxu0 %v4274_v53  ;;  %v4356_v53 = vld [vmem:[#allocation5 + $0x540] ss:$16 sps:$4 sm:$0xff]  }
  0xb1   :  { %2490 = vmatpush1.bf16.msra.mxu1 %v4276_v54  ;;  %v4359_v54 = vld [vmem:[#allocation5 + $0x148] ss:$16 sps:$4 sm:$0xff]  }
  0xb2   :  { %2531 = vmatpush1.bf16.msra.mxu0 %v4277_v55  ;;  %2491 = vmatprep.subr.bf16.mxu1 %v4278_v56  ;;  %v4364_v55 = vld [vmem:[#allocation5 + $0x564] ss:$16 sps:$4 sm:$0xff]   ;;  %v4367_v56 = vld [vmem:[#allocation5 + $0x16c] ss:$16 sps:$4 sm:$0xff]  }
  0xb3   :  { %2532 = vmatprep.subr.bf16.mxu0 %v4280_v57  ;;  %v4362_v57 = vld [vmem:[#allocation5 + $0x560] ss:$16 sps:$4 sm:$0xff]  }
  0xb5   :  { %2492 = vmatpush1.bf16.msra.mxu1 %v4282_v58  ;;  %v4365_v58 = vld [vmem:[#allocation5 + $0x168] ss:$16 sps:$4 sm:$0xff]  }
  0xb6   :  { %2533 = vmatpush1.bf16.msra.mxu0 %v4283_v59  ;;  %2493 = vmatprep.subr.bf16.mxu1 %v4284_v60  ;;  %v4370_v59 = vld [vmem:[#allocation5 + $0x584] ss:$16 sps:$4 sm:$0xff]   ;;  %v4373_v60 = vld [vmem:[#allocation5 + $0x18c] ss:$16 sps:$4 sm:$0xff]  }
  0xb7   :  { %2534 = vmatprep.subr.bf16.mxu0 %v4286_v61  ;;  %v4368_v61 = vld [vmem:[#allocation5 + $0x580] ss:$16 sps:$4 sm:$0xff]  }
  0xb9   :  { %2494 = vmatpush1.bf16.msra.mxu1 %v4288_v62  ;;  %v4371_v62 = vld [vmem:[#allocation5 + $0x188] ss:$16 sps:$4 sm:$0xff]  }
  0xba   :  { %2535 = vmatpush1.bf16.msra.mxu0 %v4289_v63  ;;  %2495 = vmatprep.subr.bf16.mxu1 %v4290_v0  ;;  %v4376_v63 = vld [vmem:[#allocation5 + $0x5a4] ss:$16 sps:$4 sm:$0xff]   ;;  %v4379_v0 = vld [vmem:[#allocation5 + $0x1ac] ss:$16 sps:$4 sm:$0xff]  }
  0xbb   :  { %2536 = vmatprep.subr.bf16.mxu0 %v4292_v1  ;;  %v4374_v1 = vld [vmem:[#allocation5 + $0x5a0] ss:$16 sps:$4 sm:$0xff]  }
  0xbd   :  { %2496 = vmatpush1.bf16.msra.mxu1 %v4294_v2  ;;  %v4377_v2 = vld [vmem:[#allocation5 + $0x1a8] ss:$16 sps:$4 sm:$0xff]  }
  0xbe   :  { %2537 = vmatpush1.bf16.msra.mxu0 %v4295_v3  ;;  %2711 = vmatprep.subr.bf16.mxu1 %v4301_v7  ;;  %v4382_v3 = vld [vmem:[#allocation5 + $0x5c4] ss:$16 sps:$4 sm:$0xff]  }
  0xbf   :  { %2547 = vmatprep.subr.bf16.mxu0 %v4298_v5  ;;  %v4380_v5 = vld [vmem:[#allocation5 + $0x5c0] ss:$16 sps:$4 sm:$0xff]   ;;  %v4388_v7 = vld [vmem:[#allocation5 + $0x5e4] ss:$16 sps:$4 sm:$0xff]  }
  0xc0   :  { %2498 = vmatmul.mubr.bf16.vlgmr.msra.gmra.mrb[0].mxu1 %v5222_v8 }
  0xc1   :  { %2539 = vmatmul.mubr.bf16.vlgmr.msra.gmra.mrb[0].mxu0 %v5224_v11  ;;  %2712 = vmatpush1.bf16.msra.mxu1 %v4299_v10  ;;  %v4386_v10 = vld [vmem:[#allocation5 + $0x5e0] ss:$16 sps:$4 sm:$0xff]  }
  0xc2   :  { %2548 = vmatpush1.bf16.msra.mxu0 %v4296_v9  ;;  %2713 = vmatprep.subr.bf16.mxu1 %v4307_v13  ;;  %v4391_v9 = vld [vmem:[#allocation5 + $0x1ec] ss:$16 sps:$4 sm:$0xff]   ;;  %v119_v13 = vld [vmem:[#allocation2 + $0x20] sm:$0xff] }
  0xc3   :  { %2549 = vmatprep.subr.bf16.mxu0 %v4304_v12  ;;  %2743 = vmatprep.mubr.bf16.mxu1 %v5216_v48  ;;  %v4350_v48 = vld [vmem:[#allocation5 + $0x520] ss:$16 sps:$4 sm:$0xff]   ;;  %v4389_v12 = vld [vmem:[#allocation5 + $0x1e8] ss:$16 sps:$4 sm:$0xff]  }
  0xc4   :  { %2579 = vmatprep.mubr.bf16.mxu0 %v5229_v36 }
  0xc5   :  { %2714 = vmatpush1.bf16.msra.mxu1 %v4305_v15  ;;  %v4397_v15 = vld [vmem:[#allocation5 + $0x20c] ss:$16 sps:$4 sm:$0xff]  }
  0xc6   :  { %2550 = vmatpush1.bf16.msra.mxu0 %v4302_v14  ;;  %2715 = vmatprep.subr.bf16.mxu1 %v4313_v17  ;;  %v4394_v14 = vld [vmem:[#allocation5 + $0x604] ss:$16 sps:$4 sm:$0xff]   ;;  %v4392_v17 = vld [vmem:[#allocation5 + $0x600] ss:$16 sps:$4 sm:$0xff]  }
  0xc7   :  { %2551 = vmatprep.subr.bf16.mxu0 %v4310_v16  ;;  %v5232_v16 = vpack.c.bf16 %v119_v13, %v119_v13  ;;  %v4476_v13 = vld [vmem:[#allocation5 + $0x7c0] ss:$16 sps:$4 sm:$0xff]  }
  0xc9   :  { %2716 = vmatpush1.bf16.msra.mxu1 %v4311_v19  ;;  %v4400_v19 = vld [vmem:[#allocation5 + $0x624] ss:$16 sps:$4 sm:$0xff]  }
  0xca   :  { %2552 = vmatpush1.bf16.msra.mxu0 %v4308_v18  ;;  %2717 = vmatprep.subr.bf16.mxu1 %v4319_v21  ;;  %v4395_v18 = vld [vmem:[#allocation5 + $0x208] ss:$16 sps:$4 sm:$0xff]  }
  0xcb   :  { %2553 = vmatprep.subr.bf16.mxu0 %v4316_v20  ;;  %v4403_v20 = vld [vmem:[#allocation5 + $0x22c] ss:$16 sps:$4 sm:$0xff]  }
  0xcc   :  { %v122_v21 = vld [vmem:[#allocation2 + $0x38] sm:$0xff] }
  0xcd   :  { %2718 = vmatpush1.bf16.msra.mxu1 %v4317_v23  ;;  %v5236_v23 = vpack.c.bf16 %v122_v21, %v122_v21  ;;  %v121_v21 = vld [vmem:[#allocation2 + $0x30] sm:$0xff] }
  0xce   :  { %2554 = vmatpush1.bf16.msra.mxu0 %v4314_v22  ;;  %2719 = vmatprep.subr.bf16.mxu1 %v4325_v25  ;;  %v4398_v22 = vld [vmem:[#allocation5 + $0x620] ss:$16 sps:$4 sm:$0xff]   ;;  %v4406_v25 = vld [vmem:[#allocation5 + $0x644] ss:$16 sps:$4 sm:$0xff]  }
  0xcf   :  { %2555 = vmatprep.subr.bf16.mxu0 %v4322_v24  ;;  %v4401_v24 = vld [vmem:[#allocation5 + $0x228] ss:$16 sps:$4 sm:$0xff]  }
  0xd1   :  { %2720 = vmatpush1.bf16.msra.mxu1 %v4323_v27  ;;  %v4404_v27 = vld [vmem:[#allocation5 + $0x640] ss:$16 sps:$4 sm:$0xff]  }
  0xd2   :  { %2556 = vmatpush1.bf16.msra.mxu0 %v4320_v26  ;;  %2721 = vmatprep.subr.bf16.mxu1 %v4331_v29  ;;  %v4409_v26 = vld [vmem:[#allocation5 + $0x24c] ss:$16 sps:$4 sm:$0xff]   ;;  %v4412_v29 = vld [vmem:[#allocation5 + $0x664] ss:$16 sps:$4 sm:$0xff]  }
  0xd3   :  { %2557 = vmatprep.subr.bf16.mxu0 %v4328_v28  ;;  %v4407_v28 = vld [vmem:[#allocation5 + $0x248] ss:$16 sps:$4 sm:$0xff]  }
  0xd5   :  { %2722 = vmatpush1.bf16.msra.mxu1 %v4329_v31  ;;  %v4413_v31 = vld [vmem:[#allocation5 + $0x268] ss:$16 sps:$4 sm:$0xff]  }
  0xd6   :  { %2558 = vmatpush1.bf16.msra.mxu0 %v4326_v30  ;;  %2723 = vmatprep.subr.bf16.mxu1 %v4337_v33  ;;  %v4410_v30 = vld [vmem:[#allocation5 + $0x660] ss:$16 sps:$4 sm:$0xff]   ;;  %v4421_v33 = vld [vmem:[#allocation5 + $0x28c] ss:$16 sps:$4 sm:$0xff]  }
  0xd7   :  { %2559 = vmatprep.subr.bf16.mxu0 %v4334_v32  ;;  %v4418_v32 = vld [vmem:[#allocation5 + $0x684] ss:$16 sps:$4 sm:$0xff]  }
  0xd9   :  { %2724 = vmatpush1.bf16.msra.mxu1 %v4335_v37  ;;  %v4427_v37 = vld [vmem:[#allocation5 + $0x2ac] ss:$16 sps:$4 sm:$0xff]  }
  0xda   :  { %2560 = vmatpush1.bf16.msra.mxu0 %v4332_v35  ;;  %2725 = vmatprep.subr.bf16.mxu1 %v4343_v39  ;;  %v4419_v35 = vld [vmem:[#allocation5 + $0x288] ss:$16 sps:$4 sm:$0xff]  }
  0xdb   :  { %2561 = vmatprep.subr.bf16.mxu0 %v4340_v38  ;;  %v4422_v38 = vld [vmem:[#allocation5 + $0x6a0] ss:$16 sps:$4 sm:$0xff]   ;;  %v4425_v39 = vld [vmem:[#allocation5 + $0x2a8] ss:$16 sps:$4 sm:$0xff]  }
  0xdd   :  { %2726 = vmatpush1.bf16.msra.mxu1 %v4341_v41  ;;  %v4433_v41 = vld [vmem:[#allocation5 + $0x2cc] ss:$16 sps:$4 sm:$0xff]  }
  0xde   :  { %2562 = vmatpush1.bf16.msra.mxu0 %v4338_v40  ;;  %2727 = vmatprep.subr.bf16.mxu1 %v4349_v43  ;;  %v4430_v40 = vld [vmem:[#allocation5 + $0x6c4] ss:$16 sps:$4 sm:$0xff]   ;;  %v4431_v43 = vld [vmem:[#allocation5 + $0x2c8] ss:$16 sps:$4 sm:$0xff]  }
  0xdf   :  { %2563 = vmatprep.subr.bf16.mxu0 %v4346_v42  ;;  %v4428_v42 = vld [vmem:[#allocation5 + $0x6c0] ss:$16 sps:$4 sm:$0xff]  }
  0xe1   :  { %2728 = vmatpush1.bf16.msra.mxu1 %v4347_v45  ;;  %v4439_v45 = vld [vmem:[#allocation5 + $0x2ec] ss:$16 sps:$4 sm:$0xff]  }
  0xe2   :  { %2564 = vmatpush1.bf16.msra.mxu0 %v4344_v44  ;;  %2729 = vmatprep.subr.bf16.mxu1 %v4355_v47  ;;  %v4436_v44 = vld [vmem:[#allocation5 + $0x6e4] ss:$16 sps:$4 sm:$0xff]   ;;  %v4437_v47 = vld [vmem:[#allocation5 + $0x2e8] ss:$16 sps:$4 sm:$0xff]  }
  0xe3   :  { %2565 = vmatprep.subr.bf16.mxu0 %v4352_v46  ;;  %v4434_v46 = vld [vmem:[#allocation5 + $0x6e0] ss:$16 sps:$4 sm:$0xff]  }
  0xe5   :  { %2730 = vmatpush1.bf16.msra.mxu1 %v4353_v49  ;;  %v4445_v49 = vld [vmem:[#allocation5 + $0x30c] ss:$16 sps:$4 sm:$0xff]  }
  0xe6   :  { %2566 = vmatpush1.bf16.msra.mxu0 %v4350_v48  ;;  %2731 = vmatprep.subr.bf16.mxu1 %v4361_v51  ;;  %v4442_v48 = vld [vmem:[#allocation5 + $0x704] ss:$16 sps:$4 sm:$0xff]   ;;  %v4443_v51 = vld [vmem:[#allocation5 + $0x308] ss:$16 sps:$4 sm:$0xff]  }
  0xe7   :  { %2567 = vmatprep.subr.bf16.mxu0 %v4358_v50  ;;  %v4440_v50 = vld [vmem:[#allocation5 + $0x700] ss:$16 sps:$4 sm:$0xff]  }
  0xe9   :  { %2732 = vmatpush1.bf16.msra.mxu1 %v4359_v54  ;;  %v4451_v54 = vld [vmem:[#allocation5 + $0x32c] ss:$16 sps:$4 sm:$0xff]  }
  0xea   :  { %2568 = vmatpush1.bf16.msra.mxu0 %v4356_v53  ;;  %2733 = vmatprep.subr.bf16.mxu1 %v4367_v56  ;;  %v4448_v53 = vld [vmem:[#allocation5 + $0x724] ss:$16 sps:$4 sm:$0xff]   ;;  %v4449_v56 = vld [vmem:[#allocation5 + $0x328] ss:$16 sps:$4 sm:$0xff]  }
  0xeb   :  { %2569 = vmatprep.subr.bf16.mxu0 %v4364_v55  ;;  %v4446_v55 = vld [vmem:[#allocation5 + $0x720] ss:$16 sps:$4 sm:$0xff]  }
  0xed   :  { %2734 = vmatpush1.bf16.msra.mxu1 %v4365_v58  ;;  %v4457_v58 = vld [vmem:[#allocation5 + $0x34c] ss:$16 sps:$4 sm:$0xff]  }
  0xee   :  { %2570 = vmatpush1.bf16.msra.mxu0 %v4362_v57  ;;  %2735 = vmatprep.subr.bf16.mxu1 %v4373_v60  ;;  %v4454_v57 = vld [vmem:[#allocation5 + $0x744] ss:$16 sps:$4 sm:$0xff]   ;;  %v4455_v60 = vld [vmem:[#allocation5 + $0x348] ss:$16 sps:$4 sm:$0xff]  }
  0xef   :  { %2571 = vmatprep.subr.bf16.mxu0 %v4370_v59  ;;  %v4452_v59 = vld [vmem:[#allocation5 + $0x740] ss:$16 sps:$4 sm:$0xff]  }
  0xf1   :  { %2736 = vmatpush1.bf16.msra.mxu1 %v4371_v62  ;;  %v4463_v62 = vld [vmem:[#allocation5 + $0x36c] ss:$16 sps:$4 sm:$0xff]  }
  0xf2   :  { %2572 = vmatpush1.bf16.msra.mxu0 %v4368_v61  ;;  %2737 = vmatprep.subr.bf16.mxu1 %v4379_v0  ;;  %v4460_v61 = vld [vmem:[#allocation5 + $0x764] ss:$16 sps:$4 sm:$0xff]   ;;  %v4461_v0 = vld [vmem:[#allocation5 + $0x368] ss:$16 sps:$4 sm:$0xff]  }
  0xf3   :  { %2573 = vmatprep.subr.bf16.mxu0 %v4376_v63  ;;  %v4458_v63 = vld [vmem:[#allocation5 + $0x760] ss:$16 sps:$4 sm:$0xff]  }
  0xf5   :  { %2738 = vmatpush1.bf16.msra.mxu1 %v4377_v2  ;;  %v4469_v2 = vld [vmem:[#allocation5 + $0x38c] ss:$16 sps:$4 sm:$0xff]  }
  0xf6   :  { %2574 = vmatpush1.bf16.msra.mxu0 %v4374_v1  ;;  %2739 = vmatprep.subr.bf16.mxu1 %v4385_v4  ;;  %v4466_v1 = vld [vmem:[#allocation5 + $0x784] ss:$16 sps:$4 sm:$0xff]   ;;  %v4467_v4 = vld [vmem:[#allocation5 + $0x388] ss:$16 sps:$4 sm:$0xff]  }
  0xf7   :  { %2575 = vmatprep.subr.bf16.mxu0 %v4382_v3  ;;  %v4464_v3 = vld [vmem:[#allocation5 + $0x780] ss:$16 sps:$4 sm:$0xff]  }
  0xf9   :  { %2740 = vmatpush1.bf16.msra.mxu1 %v4383_v6  ;;  %v4475_v6 = vld [vmem:[#allocation5 + $0x3ac] ss:$16 sps:$4 sm:$0xff]  }
  0xfa   :  { %2576 = vmatpush1.bf16.msra.mxu0 %v4380_v5  ;;  %2741 = vmatprep.subr.bf16.mxu1 %v4391_v9  ;;  %v4472_v5 = vld [vmem:[#allocation5 + $0x7a4] ss:$16 sps:$4 sm:$0xff]   ;;  %v4473_v9 = vld [vmem:[#allocation5 + $0x3a8] ss:$16 sps:$4 sm:$0xff]  }
  0xfb   :  { %2577 = vmatprep.subr.bf16.mxu0 %v4388_v7  ;;  %v4470_v7 = vld [vmem:[#allocation5 + $0x7a0] ss:$16 sps:$4 sm:$0xff]  }
  0xfd   :  { %2742 = vmatpush1.bf16.msra.mxu1 %v4389_v12  ;;  %v4481_v12 = vld [vmem:[#allocation5 + $0x3cc] ss:$16 sps:$4 sm:$0xff]  }
  0xfe   :  { %2578 = vmatpush1.bf16.msra.mxu0 %v4386_v10  ;;  %2752 = vmatprep.subr.bf16.mxu1 %v4397_v15  ;;  %v4478_v10 = vld [vmem:[#allocation5 + $0x7c4] ss:$16 sps:$4 sm:$0xff]  }
  0xff   :  { %2588 = vmatprep.subr.bf16.mxu0 %v4394_v14  ;;  %v4479_v14 = vld [vmem:[#allocation5 + $0x3c8] ss:$16 sps:$4 sm:$0xff]   ;;  %v4484_v15 = vld [vmem:[#allocation5 + $0x7e4] ss:$16 sps:$4 sm:$0xff]  }
 0x100   :  { %2744 = vmatmul.mubr.bf16.vlgmr.msra.gmra.mrb[4].mxu1 %v5222_v8  ;;  %v4415_v8 = vld [vmem:[#allocation5 + $0x26c] ss:$16 sps:$4 sm:$0xff]  }
 0x101   :  { %2580 = vmatmul.mubr.bf16.vlgmr.msra.gmra.mrb[0].mxu0 %v5232_v16  ;;  %2753 = vmatpush1.bf16.msra.mxu1 %v4395_v18  ;;  %v4482_v18 = vld [vmem:[#allocation5 + $0x7e0] ss:$16 sps:$4 sm:$0xff]  }
 0x102   :  { %2589 = vmatpush1.bf16.msra.mxu0 %v4392_v17  ;;  %2754 = vmatprep.subr.bf16.mxu1 %v4403_v20  ;;  %v4487_v17 = vld [vmem:[#allocation5 + $0x3ec] ss:$16 sps:$4 sm:$0xff]   ;;  %v4490_v20 = vld [vmem:[#allocation5 + $0x804] ss:$16 sps:$4 sm:$0xff]  }
 0x103   :  { %2590 = vmatprep.subr.bf16.mxu0 %v4400_v19  ;;  %2620 = vmatprep.mubr.bf16.mxu0 %v5236_v23  ;;  %v4485_v19 = vld [vmem:[#allocation5 + $0x3e8] ss:$16 sps:$4 sm:$0xff]  }
 0x104   :  { %2784 = vmatprep.mubr.bf16.mxu1 %v5218_v52  ;;  %v4424_v52 = vld [vmem:[#allocation5 + $0x6a4] ss:$16 sps:$4 sm:$0xff]  }
 0x105   :  { %2755 = vmatpush1.bf16.msra.mxu1 %v4401_v24  ;;  %v4488_v24 = vld [vmem:[#allocation5 + $0x800] ss:$16 sps:$4 sm:$0xff]  }
 0x106   :  { %2591 = vmatpush1.bf16.msra.mxu0 %v4398_v22  ;;  %2756 = vmatprep.subr.bf16.mxu1 %v4409_v26  ;;  %v4493_v22 = vld [vmem:[#allocation5 + $0x40c] ss:$16 sps:$4 sm:$0xff]  }
 0x107   :  { %2592 = vmatprep.subr.bf16.mxu0 %v4406_v25  ;;  %v5240_v25 = vpack.c.bf16 %v121_v21, %v121_v21  ;;  %v124_v26 = vld [vmem:[#allocation2 + $0x48] sm:$0xff] }
 0x108   :  { %v4575_v21 = vld [vmem:[#allocation5 + $0x5c8] ss:$16 sps:$4 sm:$0xff]  }
 0x109   :  { %2757 = vmatpush1.bf16.msra.mxu1 %v4407_v28  ;;  %v4496_v28 = vld [vmem:[#allocation5 + $0x824] ss:$16 sps:$4 sm:$0xff]  }
 0x10a   :  { %2593 = vmatpush1.bf16.msra.mxu0 %v4404_v27  ;;  %2758 = vmatprep.subr.bf16.mxu1 %v4415_v8  ;;  %v4491_v27 = vld [vmem:[#allocation5 + $0x408] ss:$16 sps:$4 sm:$0xff]   ;;  %v5242_v8 = vpack.c.bf16 %v124_v26, %v124_v26  ;;  %v4578_v26 = vld [vmem:[#allocation5 + $0x9e0] ss:$16 sps:$4 sm:$0xff]  }
 0x10b   :  { %2594 = vmatprep.subr.bf16.mxu0 %v4412_v29  ;;  %v4499_v29 = vld [vmem:[#allocation5 + $0x42c] ss:$16 sps:$4 sm:$0xff]  }
 0x10d   :  { %2759 = vmatpush1.bf16.msra.mxu1 %v4413_v31  ;;  %v4497_v31 = vld [vmem:[#allocation5 + $0x428] ss:$16 sps:$4 sm:$0xff]  }
 0x10e   :  { %2595 = vmatpush1.bf16.msra.mxu0 %v4410_v30  ;;  %2760 = vmatprep.subr.bf16.mxu1 %v4421_v33  ;;  %v4494_v30 = vld [vmem:[#allocation5 + $0x820] ss:$16 sps:$4 sm:$0xff]   ;;  %v4505_v33 = vld [vmem:[#allocation5 + $0x44c] ss:$16 sps:$4 sm:$0xff]  }
 0x10f   :  { %2596 = vmatprep.subr.bf16.mxu0 %v4418_v32  ;;  %v4502_v32 = vld [vmem:[#allocation5 + $0x844] ss:$16 sps:$4 sm:$0xff]  }
 0x111   :  { %2761 = vmatpush1.bf16.msra.mxu1 %v4419_v35  ;;  %v4503_v35 = vld [vmem:[#allocation5 + $0x448] ss:$16 sps:$4 sm:$0xff]  }
 0x112   :  { %2597 = vmatpush1.bf16.msra.mxu0 %v4416_v34  ;;  %2762 = vmatprep.subr.bf16.mxu1 %v4427_v37  ;;  %v4500_v34 = vld [vmem:[#allocation5 + $0x840] ss:$16 sps:$4 sm:$0xff]  }
 0x113   :  { %2598 = vmatprep.subr.bf16.mxu0 %v4424_v52  ;;  %v4508_v52 = vld [vmem:[#allocation5 + $0x864] ss:$16 sps:$4 sm:$0xff]   ;;  %v4506_v37 = vld [vmem:[#allocation5 + $0x860] ss:$16 sps:$4 sm:$0xff]  }
 0x115   :  { %2763 = vmatpush1.bf16.msra.mxu1 %v4425_v39  ;;  %v4514_v39 = vld [vmem:[#allocation5 + $0x884] ss:$16 sps:$4 sm:$0xff]  }
 0x116   :  { %2599 = vmatpush1.bf16.msra.mxu0 %v4422_v38  ;;  %2764 = vmatprep.subr.bf16.mxu1 %v4433_v41  ;;  %v4509_v38 = vld [vmem:[#allocation5 + $0x468] ss:$16 sps:$4 sm:$0xff]   ;;  %v4512_v41 = vld [vmem:[#allocation5 + $0x880] ss:$16 sps:$4 sm:$0xff]  }
 0x117   :  { %2600 = vmatprep.subr.bf16.mxu0 %v4430_v40  ;;  %v4517_v40 = vld [vmem:[#allocation5 + $0x48c] ss:$16 sps:$4 sm:$0xff]  }
 0x119   :  { %2765 = vmatpush1.bf16.msra.mxu1 %v4431_v43  ;;  %v4523_v43 = vld [vmem:[#allocation5 + $0x4ac] ss:$16 sps:$4 sm:$0xff]  }
 0x11a   :  { %2601 = vmatpush1.bf16.msra.mxu0 %v4428_v42  ;;  %2766 = vmatprep.subr.bf16.mxu1 %v4439_v45  ;;  %v4520_v42 = vld [vmem:[#allocation5 + $0x8a4] ss:$16 sps:$4 sm:$0xff]   ;;  %v4521_v45 = vld [vmem:[#allocation5 + $0x4a8] ss:$16 sps:$4 sm:$0xff]  }
 0x11b   :  { %2602 = vmatprep.subr.bf16.mxu0 %v4436_v44  ;;  %v4518_v44 = vld [vmem:[#allocation5 + $0x8a0] ss:$16 sps:$4 sm:$0xff]  }
 0x11d   :  { %2767 = vmatpush1.bf16.msra.mxu1 %v4437_v47  ;;  %v4529_v47 = vld [vmem:[#allocation5 + $0x4cc] ss:$16 sps:$4 sm:$0xff]  }
 0x11e   :  { %2603 = vmatpush1.bf16.msra.mxu0 %v4434_v46  ;;  %2768 = vmatprep.subr.bf16.mxu1 %v4445_v49  ;;  %v4526_v46 = vld [vmem:[#allocation5 + $0x8c4] ss:$16 sps:$4 sm:$0xff]   ;;  %v4527_v49 = vld [vmem:[#allocation5 + $0x4c8] ss:$16 sps:$4 sm:$0xff]  }
 0x11f   :  { %2604 = vmatprep.subr.bf16.mxu0 %v4442_v48  ;;  %v4524_v48 = vld [vmem:[#allocation5 + $0x8c0] ss:$16 sps:$4 sm:$0xff]  }
 0x121   :  { %2769 = vmatpush1.bf16.msra.mxu1 %v4443_v51  ;;  %v4535_v51 = vld [vmem:[#allocation5 + $0x4ec] ss:$16 sps:$4 sm:$0xff]  }
 0x122   :  { %2605 = vmatpush1.bf16.msra.mxu0 %v4440_v50  ;;  %2770 = vmatprep.subr.bf16.mxu1 %v4451_v54  ;;  %v4532_v50 = vld [vmem:[#allocation5 + $0x8e4] ss:$16 sps:$4 sm:$0xff]   ;;  %v4533_v54 = vld [vmem:[#allocation5 + $0x4e8] ss:$16 sps:$4 sm:$0xff]  }
 0x123   :  { %2606 = vmatprep.subr.bf16.mxu0 %v4448_v53  ;;  %v4530_v53 = vld [vmem:[#allocation5 + $0x8e0] ss:$16 sps:$4 sm:$0xff]  }
 0x125   :  { %2771 = vmatpush1.bf16.msra.mxu1 %v4449_v56  ;;  %v4541_v56 = vld [vmem:[#allocation5 + $0x50c] ss:$16 sps:$4 sm:$0xff]  }
 0x126   :  { %2607 = vmatpush1.bf16.msra.mxu0 %v4446_v55  ;;  %2772 = vmatprep.subr.bf16.mxu1 %v4457_v58  ;;  %v4538_v55 = vld [vmem:[#allocation5 + $0x904] ss:$16 sps:$4 sm:$0xff]   ;;  %v4539_v58 = vld [vmem:[#allocation5 + $0x508] ss:$16 sps:$4 sm:$0xff]  }
 0x127   :  { %2608 = vmatprep.subr.bf16.mxu0 %v4454_v57  ;;  %v4536_v57 = vld [vmem:[#allocation5 + $0x900] ss:$16 sps:$4 sm:$0xff]  }
 0x129   :  { %2773 = vmatpush1.bf16.msra.mxu1 %v4455_v60  ;;  %v4547_v60 = vld [vmem:[#allocation5 + $0x52c] ss:$16 sps:$4 sm:$0xff]  }
 0x12a   :  { %2609 = vmatpush1.bf16.msra.mxu0 %v4452_v59  ;;  %2774 = vmatprep.subr.bf16.mxu1 %v4463_v62  ;;  %v4544_v59 = vld [vmem:[#allocation5 + $0x924] ss:$16 sps:$4 sm:$0xff]   ;;  %v4545_v62 = vld [vmem:[#allocation5 + $0x528] ss:$16 sps:$4 sm:$0xff]  }
 0x12b   :  { %2610 = vmatprep.subr.bf16.mxu0 %v4460_v61  ;;  %v4542_v61 = vld [vmem:[#allocation5 + $0x920] ss:$16 sps:$4 sm:$0xff]  }
 0x12d   :  { %2775 = vmatpush1.bf16.msra.mxu1 %v4461_v0  ;;  %v4553_v0 = vld [vmem:[#allocation5 + $0x54c] ss:$16 sps:$4 sm:$0xff]  }
 0x12e   :  { %2611 = vmatpush1.bf16.msra.mxu0 %v4458_v63  ;;  %2776 = vmatprep.subr.bf16.mxu1 %v4469_v2  ;;  %v4550_v63 = vld [vmem:[#allocation5 + $0x944] ss:$16 sps:$4 sm:$0xff]   ;;  %v4551_v2 = vld [vmem:[#allocation5 + $0x548] ss:$16 sps:$4 sm:$0xff]  }
 0x12f   :  { %2612 = vmatprep.subr.bf16.mxu0 %v4466_v1  ;;  %v4548_v1 = vld [vmem:[#allocation5 + $0x940] ss:$16 sps:$4 sm:$0xff]  }
 0x131   :  { %2777 = vmatpush1.bf16.msra.mxu1 %v4467_v4  ;;  %v4559_v4 = vld [vmem:[#allocation5 + $0x56c] ss:$16 sps:$4 sm:$0xff]  }
 0x132   :  { %2613 = vmatpush1.bf16.msra.mxu0 %v4464_v3  ;;  %2778 = vmatprep.subr.bf16.mxu1 %v4475_v6  ;;  %v4556_v3 = vld [vmem:[#allocation5 + $0x964] ss:$16 sps:$4 sm:$0xff]   ;;  %v4557_v6 = vld [vmem:[#allocation5 + $0x568] ss:$16 sps:$4 sm:$0xff]  }
 0x133   :  { %2614 = vmatprep.subr.bf16.mxu0 %v4472_v5  ;;  %v4554_v5 = vld [vmem:[#allocation5 + $0x960] ss:$16 sps:$4 sm:$0xff]  }
 0x135   :  { %2779 = vmatpush1.bf16.msra.mxu1 %v4473_v9  ;;  %v4565_v9 = vld [vmem:[#allocation5 + $0x58c] ss:$16 sps:$4 sm:$0xff]  }
 0x136   :  { %2615 = vmatpush1.bf16.msra.mxu0 %v4470_v7  ;;  %2780 = vmatprep.subr.bf16.mxu1 %v4481_v12  ;;  %v4562_v7 = vld [vmem:[#allocation5 + $0x984] ss:$16 sps:$4 sm:$0xff]   ;;  %v4563_v12 = vld [vmem:[#allocation5 + $0x588] ss:$16 sps:$4 sm:$0xff]  }
 0x137   :  { %2616 = vmatprep.subr.bf16.mxu0 %v4478_v10  ;;  %v4560_v10 = vld [vmem:[#allocation5 + $0x980] ss:$16 sps:$4 sm:$0xff]  }
 0x139   :  { %2781 = vmatpush1.bf16.msra.mxu1 %v4479_v14  ;;  %v4571_v14 = vld [vmem:[#allocation5 + $0x5ac] ss:$16 sps:$4 sm:$0xff]  }
 0x13a   :  { %2617 = vmatpush1.bf16.msra.mxu0 %v4476_v13  ;;  %2782 = vmatprep.subr.bf16.mxu1 %v4487_v17  ;;  %v4568_v13 = vld [vmem:[#allocation5 + $0x9a4] ss:$16 sps:$4 sm:$0xff]   ;;  %v4569_v17 = vld [vmem:[#allocation5 + $0x5a8] ss:$16 sps:$4 sm:$0xff]  }
 0x13b   :  { %2618 = vmatprep.subr.bf16.mxu0 %v4484_v15  ;;  %v4566_v15 = vld [vmem:[#allocation5 + $0x9a0] ss:$16 sps:$4 sm:$0xff]  }
 0x13d   :  { %2783 = vmatpush1.bf16.msra.mxu1 %v4485_v19  ;;  %v4577_v19 = vld [vmem:[#allocation5 + $0x5cc] ss:$16 sps:$4 sm:$0xff]  }
 0x13e   :  { %2619 = vmatpush1.bf16.msra.mxu0 %v4482_v18  ;;  %2793 = vmatprep.subr.bf16.mxu1 %v4493_v22  ;;  %v4574_v18 = vld [vmem:[#allocation5 + $0x9c4] ss:$16 sps:$4 sm:$0xff]  }
 0x13f   :  { %2629 = vmatprep.subr.bf16.mxu0 %v4490_v20  ;;  %v4572_v20 = vld [vmem:[#allocation5 + $0x9c0] ss:$16 sps:$4 sm:$0xff]   ;;  %v4580_v22 = vld [vmem:[#allocation5 + $0x9e4] ss:$16 sps:$4 sm:$0xff]  }
 0x140   :  { %2785 = vmatmul.mubr.bf16.vlgmr.msra.gmra.mrb[4].mxu1 %v5224_v11  ;;  %v4511_v11 = vld [vmem:[#allocation5 + $0x46c] ss:$16 sps:$4 sm:$0xff]  }
 0x141   :  { %2621 = vmatmul.mubr.bf16.vlgmr.msra.gmra.mrb[0].mxu0 %v5240_v25  ;;  %2794 = vmatpush1.bf16.msra.mxu1 %v4491_v27  ;;  %v4581_v27 = vld [vmem:[#allocation5 + $0x5e8] ss:$16 sps:$4 sm:$0xff]  }
 0x142   :  { %2630 = vmatpush1.bf16.msra.mxu0 %v4488_v24  ;;  %2795 = vmatprep.subr.bf16.mxu1 %v4499_v29  ;;  %v4583_v24 = vld [vmem:[#allocation5 + $0x5ec] ss:$16 sps:$4 sm:$0xff]  }
 0x143   :  { %2631 = vmatprep.subr.bf16.mxu0 %v4496_v28  ;;  %2661 = vmatprep.mubr.bf16.mxu0 %v5242_v8  ;;  %v4586_v28 = vld [vmem:[#allocation5 + $0xa04] ss:$16 sps:$4 sm:$0xff]   ;;  %v4589_v29 = vld [vmem:[#allocation5 + $0x60c] ss:$16 sps:$4 sm:$0xff]  }
 0x144   :  { %2825 = vmatprep.mubr.bf16.mxu1 %v5229_v36  ;;  %v4515_v36 = vld [vmem:[#allocation5 + $0x488] ss:$16 sps:$4 sm:$0xff]  }
 0x145   :  { %2796 = vmatpush1.bf16.msra.mxu1 %v4497_v31  ;;  %v126_v31 = vld [vmem:[#allocation2 + $0x58] sm:$0xff] }
 0x146   :  { %2632 = vmatpush1.bf16.msra.mxu0 %v4494_v30  ;;  %2797 = vmatprep.subr.bf16.mxu1 %v4505_v33  ;;  %v123_v30 = vld [vmem:[#allocation2 + $0x40] sm:$0xff]  ;;  %v4587_v33 = vld [vmem:[#allocation5 + $0x608] ss:$16 sps:$4 sm:$0xff]  }
 0x147   :  { %2633 = vmatprep.subr.bf16.mxu0 %v4502_v32  ;;  %v4584_v32 = vld [vmem:[#allocation5 + $0xa00] ss:$16 sps:$4 sm:$0xff]  }
 0x149   :  { %2798 = vmatpush1.bf16.msra.mxu1 %v4503_v35  ;;  %v4592_v35 = vld [vmem:[#allocation5 + $0xa24] ss:$16 sps:$4 sm:$0xff]  }
 0x14a   :  { %2634 = vmatpush1.bf16.msra.mxu0 %v4500_v34  ;;  %2799 = vmatprep.subr.bf16.mxu1 %v4511_v11  ;;  %v5248_v34 = vpack.c.bf16 %v123_v30, %v123_v30  ;;  %v4590_v11 = vld [vmem:[#allocation5 + $0xa20] ss:$16 sps:$4 sm:$0xff]   ;;  %v4670_v30 = vld [vmem:[#allocation5 + $0xbc4] ss:$16 sps:$4 sm:$0xff]  }
 0x14b   :  { %2635 = vmatprep.subr.bf16.mxu0 %v4508_v52  ;;  %v4595_v52 = vld [vmem:[#allocation5 + $0x62c] ss:$16 sps:$4 sm:$0xff]  }
 0x14d   :  { %2800 = vmatpush1.bf16.msra.mxu1 %v4509_v38  ;;  %v5250_v38 = vpack.c.bf16 %v126_v31, %v126_v31  ;;  %v4673_v31 = vld [vmem:[#allocation5 + $0x7cc] ss:$16 sps:$4 sm:$0xff]  }
 0x14e   :  { %2636 = vmatpush1.bf16.msra.mxu0 %v4506_v37  ;;  %2801 = vmatprep.subr.bf16.mxu1 %v4517_v40  ;;  %v4593_v37 = vld [vmem:[#allocation5 + $0x628] ss:$16 sps:$4 sm:$0xff]   ;;  %v4601_v40 = vld [vmem:[#allocation5 + $0x64c] ss:$16 sps:$4 sm:$0xff]  }
 0x14f   :  { %2637 = vmatprep.subr.bf16.mxu0 %v4514_v39  ;;  %v4598_v39 = vld [vmem:[#allocation5 + $0xa44] ss:$16 sps:$4 sm:$0xff]  }
 0x151   :  { %2802 = vmatpush1.bf16.msra.mxu1 %v4515_v36  ;;  %v4599_v36 = vld [vmem:[#allocation5 + $0x648] ss:$16 sps:$4 sm:$0xff]  }
 0x152   :  { %2638 = vmatpush1.bf16.msra.mxu0 %v4512_v41  ;;  %2803 = vmatprep.subr.bf16.mxu1 %v4523_v43  ;;  %v4596_v41 = vld [vmem:[#allocation5 + $0xa40] ss:$16 sps:$4 sm:$0xff]   ;;  %v4607_v43 = vld [vmem:[#allocation5 + $0x66c] ss:$16 sps:$4 sm:$0xff]  }
 0x153   :  { %2639 = vmatprep.subr.bf16.mxu0 %v4520_v42  ;;  %v4604_v42 = vld [vmem:[#allocation5 + $0xa64] ss:$16 sps:$4 sm:$0xff]  }
 0x155   :  { %2804 = vmatpush1.bf16.msra.mxu1 %v4521_v45  ;;  %v4610_v45 = vld [vmem:[#allocation5 + $0xa84] ss:$16 sps:$4 sm:$0xff]  }
 0x156   :  { %2640 = vmatpush1.bf16.msra.mxu0 %v4518_v44  ;;  %2805 = vmatprep.subr.bf16.mxu1 %v4529_v47  ;;  %v4602_v44 = vld [vmem:[#allocation5 + $0xa60] ss:$16 sps:$4 sm:$0xff]  }
 0x157   :  { %2641 = vmatprep.subr.bf16.mxu0 %v4526_v46  ;;  %v4613_v46 = vld [vmem:[#allocation5 + $0x68c] ss:$16 sps:$4 sm:$0xff]   ;;  %v4608_v47 = vld [vmem:[#allocation5 + $0xa80] ss:$16 sps:$4 sm:$0xff]  }
 0x159   :  { %2806 = vmatpush1.bf16.msra.mxu1 %v4527_v49  ;;  %v4616_v49 = vld [vmem:[#allocation5 + $0xaa4] ss:$16 sps:$4 sm:$0xff]  }
 0x15a   :  { %2642 = vmatpush1.bf16.msra.mxu0 %v4524_v48  ;;  %2807 = vmatprep.subr.bf16.mxu1 %v4535_v51  ;;  %v4611_v48 = vld [vmem:[#allocation5 + $0x688] ss:$16 sps:$4 sm:$0xff]  }
 0x15b   :  { %2643 = vmatprep.subr.bf16.mxu0 %v4532_v50  ;;  %v4614_v50 = vld [vmem:[#allocation5 + $0xaa0] ss:$16 sps:$4 sm:$0xff]   ;;  %v4617_v51 = vld [vmem:[#allocation5 + $0x6a8] ss:$16 sps:$4 sm:$0xff]  }
 0x15d   :  { %2808 = vmatpush1.bf16.msra.mxu1 %v4533_v54  ;;  %v4625_v54 = vld [vmem:[#allocation5 + $0x6cc] ss:$16 sps:$4 sm:$0xff]  }
 0x15e   :  { %2644 = vmatpush1.bf16.msra.mxu0 %v4530_v53  ;;  %2809 = vmatprep.subr.bf16.mxu1 %v4541_v56  ;;  %v4622_v53 = vld [vmem:[#allocation5 + $0xac4] ss:$16 sps:$4 sm:$0xff]   ;;  %v4620_v56 = vld [vmem:[#allocation5 + $0xac0] ss:$16 sps:$4 sm:$0xff]  }
 0x15f   :  { %2645 = vmatprep.subr.bf16.mxu0 %v4538_v55 }
 0x161   :  { %2810 = vmatpush1.bf16.msra.mxu1 %v4539_v58 }
 0x162   :  { %2646 = vmatpush1.bf16.msra.mxu0 %v4536_v57  ;;  %2811 = vmatprep.subr.bf16.mxu1 %v4547_v60  ;;  %v4623_v57 = vld [vmem:[#allocation5 + $0x6c8] ss:$16 sps:$4 sm:$0xff]   ;;  %v4628_v60 = vld [vmem:[#allocation5 + $0xae4] ss:$16 sps:$4 sm:$0xff]  }
 0x163   :  { %2647 = vmatprep.subr.bf16.mxu0 %v4544_v59 }
 0x165   :  { %2812 = vmatpush1.bf16.msra.mxu1 %v4545_v62 }
 0x166   :  { %2648 = vmatpush1.bf16.msra.mxu0 %v4542_v61  ;;  %2813 = vmatprep.subr.bf16.mxu1 %v4553_v0  ;;  %v4631_v61 = vld [vmem:[#allocation5 + $0x6ec] ss:$16 sps:$4 sm:$0xff]   ;;  %v4629_v0 = vld [vmem:[#allocation5 + $0x6e8] ss:$16 sps:$4 sm:$0xff]  }
 0x167   :  { %2649 = vmatprep.subr.bf16.mxu0 %v4550_v63  ;;  %v4626_v63 = vld [vmem:[#allocation5 + $0xae0] ss:$16 sps:$4 sm:$0xff]  }
 0x169   :  { %2814 = vmatpush1.bf16.msra.mxu1 %v4551_v2  ;;  %v4637_v2 = vld [vmem:[#allocation5 + $0x70c] ss:$16 sps:$4 sm:$0xff]  }
 0x16a   :  { %2650 = vmatpush1.bf16.msra.mxu0 %v4548_v1  ;;  %2815 = vmatprep.subr.bf16.mxu1 %v4559_v4  ;;  %v4634_v1 = vld [vmem:[#allocation5 + $0xb04] ss:$16 sps:$4 sm:$0xff]   ;;  %v4635_v4 = vld [vmem:[#allocation5 + $0x708] ss:$16 sps:$4 sm:$0xff]  }
 0x16b   :  { %2651 = vmatprep.subr.bf16.mxu0 %v4556_v3  ;;  %v4632_v3 = vld [vmem:[#allocation5 + $0xb00] ss:$16 sps:$4 sm:$0xff]  }
 0x16d   :  { %2816 = vmatpush1.bf16.msra.mxu1 %v4557_v6  ;;  %v4643_v6 = vld [vmem:[#allocation5 + $0x72c] ss:$16 sps:$4 sm:$0xff]  }
 0x16e   :  { %2652 = vmatpush1.bf16.msra.mxu0 %v4554_v5  ;;  %2817 = vmatprep.subr.bf16.mxu1 %v4565_v9  ;;  %v4640_v5 = vld [vmem:[#allocation5 + $0xb24] ss:$16 sps:$4 sm:$0xff]   ;;  %v4641_v9 = vld [vmem:[#allocation5 + $0x728] ss:$16 sps:$4 sm:$0xff]  }
 0x16f   :  { %2653 = vmatprep.subr.bf16.mxu0 %v4562_v7  ;;  %v4638_v7 = vld [vmem:[#allocation5 + $0xb20] ss:$16 sps:$4 sm:$0xff]  }
 0x171   :  { %2818 = vmatpush1.bf16.msra.mxu1 %v4563_v12  ;;  %v4649_v12 = vld [vmem:[#allocation5 + $0x74c] ss:$16 sps:$4 sm:$0xff]  }
 0x172   :  { %2654 = vmatpush1.bf16.msra.mxu0 %v4560_v10  ;;  %2819 = vmatprep.subr.bf16.mxu1 %v4571_v14  ;;  %v4646_v10 = vld [vmem:[#allocation5 + $0xb44] ss:$16 sps:$4 sm:$0xff]   ;;  %v4647_v14 = vld [vmem:[#allocation5 + $0x748] ss:$16 sps:$4 sm:$0xff]  }
 0x173   :  { %2655 = vmatprep.subr.bf16.mxu0 %v4568_v13  ;;  %v4644_v13 = vld [vmem:[#allocation5 + $0xb40] ss:$16 sps:$4 sm:$0xff]  }
 0x175   :  { %2820 = vmatpush1.bf16.msra.mxu1 %v4569_v17  ;;  %v4655_v17 = vld [vmem:[#allocation5 + $0x76c] ss:$16 sps:$4 sm:$0xff]  }
 0x176   :  { %2656 = vmatpush1.bf16.msra.mxu0 %v4566_v15  ;;  %2821 = vmatprep.subr.bf16.mxu1 %v4577_v19  ;;  %v4652_v15 = vld [vmem:[#allocation5 + $0xb64] ss:$16 sps:$4 sm:$0xff]   ;;  %v4653_v19 = vld [vmem:[#allocation5 + $0x768] ss:$16 sps:$4 sm:$0xff]  }
 0x177   :  { %2657 = vmatprep.subr.bf16.mxu0 %v4574_v18  ;;  %v4650_v18 = vld [vmem:[#allocation5 + $0xb60] ss:$16 sps:$4 sm:$0xff]  }
 0x179   :  { %2822 = vmatpush1.bf16.msra.mxu1 %v4575_v21  ;;  %v4661_v21 = vld [vmem:[#allocation5 + $0x78c] ss:$16 sps:$4 sm:$0xff]  }
 0x17a   :  { %2658 = vmatpush1.bf16.msra.mxu0 %v4572_v20  ;;  %2823 = vmatprep.subr.bf16.mxu1 %v4583_v24  ;;  %v4658_v20 = vld [vmem:[#allocation5 + $0xb84] ss:$16 sps:$4 sm:$0xff]   ;;  %v4659_v24 = vld [vmem:[#allocation5 + $0x788] ss:$16 sps:$4 sm:$0xff]  }
 0x17b   :  { %2659 = vmatprep.subr.bf16.mxu0 %v4580_v22  ;;  %v4656_v22 = vld [vmem:[#allocation5 + $0xb80] ss:$16 sps:$4 sm:$0xff]  }
 0x17d   :  { %2824 = vmatpush1.bf16.msra.mxu1 %v4581_v27  ;;  %v4667_v27 = vld [vmem:[#allocation5 + $0x7ac] ss:$16 sps:$4 sm:$0xff]  }
 0x17e   :  { %2660 = vmatpush1.bf16.msra.mxu0 %v4578_v26  ;;  %2834 = vmatprep.subr.bf16.mxu1 %v4589_v29  ;;  %v4664_v26 = vld [vmem:[#allocation5 + $0xba4] ss:$16 sps:$4 sm:$0xff]   ;;  %v4665_v29 = vld [vmem:[#allocation5 + $0x7a8] ss:$16 sps:$4 sm:$0xff]  }
 0x17f   :  { %2670 = vmatprep.subr.bf16.mxu0 %v4586_v28  ;;  %v4662_v28 = vld [vmem:[#allocation5 + $0xba0] ss:$16 sps:$4 sm:$0xff]  }
 0x180   :  { %2826 = vmatmul.mubr.bf16.vlgmr.msra.gmra.mrb[4].mxu1 %v5232_v16  ;;  %v4605_v16 = vld [vmem:[#allocation5 + $0x668] ss:$16 sps:$4 sm:$0xff]  }
 0x181   :  { %2662 = vmatmul.mubr.bf16.vlgmr.msra.gmra.mrb[0].mxu0 %v5248_v34  ;;  %2835 = vmatpush1.bf16.msra.mxu1 %v4587_v33  ;;  %v4671_v33 = vld [vmem:[#allocation5 + $0x7c8] ss:$16 sps:$4 sm:$0xff]  }
 0x182   :  { %2671 = vmatpush1.bf16.msra.mxu0 %v4584_v32  ;;  %2836 = vmatprep.subr.bf16.mxu1 %v4595_v52  ;;  %v4668_v32 = vld [vmem:[#allocation5 + $0xbc0] ss:$16 sps:$4 sm:$0xff]   ;;  %v4679_v52 = vld [vmem:[#allocation5 + $0x7ec] ss:$16 sps:$4 sm:$0xff]  }
 0x183   :  { %2672 = vmatprep.subr.bf16.mxu0 %v4592_v35  ;;  %2702 = vmatprep.mubr.bf16.mxu0 %v5250_v38  ;;  %v4676_v35 = vld [vmem:[#allocation5 + $0xbe4] ss:$16 sps:$4 sm:$0xff]  }
 0x184   :  { %2866 = vmatprep.mubr.bf16.mxu1 %v5236_v23  ;;  %v4619_v23 = vld [vmem:[#allocation5 + $0x6ac] ss:$16 sps:$4 sm:$0xff]  }
 0x185   :  { %2837 = vmatpush1.bf16.msra.mxu1 %v4593_v37  ;;  %v4677_v37 = vld [vmem:[#allocation5 + $0x7e8] ss:$16 sps:$4 sm:$0xff]  }
 0x186   :  { %2673 = vmatpush1.bf16.msra.mxu0 %v4590_v11  ;;  %2838 = vmatprep.subr.bf16.mxu1 %v4601_v40  ;;  %v4674_v11 = vld [vmem:[#allocation5 + $0xbe0] ss:$16 sps:$4 sm:$0xff]   ;;  %v4682_v40 = vld [vmem:[#allocation5 + $0x80c] ss:$16 sps:$4 sm:$0xff]  }
 0x187   :  { %2674 = vmatprep.subr.bf16.mxu0 %v4598_v39  ;;  %v125_v39 = vld [vmem:[#allocation2 + $0x50] sm:$0xff] }
 0x189   :  { %2839 = vmatpush1.bf16.msra.mxu1 %v4599_v36  ;;  %v4680_v36 = vld [vmem:[#allocation5 + $0x808] ss:$16 sps:$4 sm:$0xff]  }
 0x18a   :  { %2675 = vmatpush1.bf16.msra.mxu0 %v4596_v41  ;;  %2840 = vmatprep.subr.bf16.mxu1 %v4607_v43  ;;  %v5260_v41 = vpack.c.bf16 %v125_v39, %v125_v39  ;;  %v4776_v43 = vld [vmem:[#allocation8] ss:$8 sps:$4 sm:$0xff]  }
 0x18b   :  { %2676 = vmatprep.subr.bf16.mxu0 %v4604_v42  ;;  %v4685_v42 = vld [vmem:[#allocation5 + $0x82c] ss:$16 sps:$4 sm:$0xff]  }
 0x18c   :  { %v4727_v39 = vld [vmem:[#allocation5 + $0x9ec] ss:$16 sps:$4 sm:$0xff]  }
 0x18d   :  { %2841 = vmatpush1.bf16.msra.mxu1 %v4605_v16  ;;  %v4683_v16 = vld [vmem:[#allocation5 + $0x828] ss:$16 sps:$4 sm:$0xff]  }
 0x18e   :  { %2677 = vmatpush1.bf16.msra.mxu0 %v4602_v44  ;;  %2842 = vmatprep.subr.bf16.mxu1 %v4613_v46  ;;  %v4778_v44 = vld [vmem:[#allocation8 + $0x4] ss:$8 sps:$4 sm:$0xff]   ;;  %v4688_v46 = vld [vmem:[#allocation5 + $0x84c] ss:$16 sps:$4 sm:$0xff]  }
 0x18f   :  { %2678 = vmatprep.subr.bf16.mxu0 %v4610_v45  ;;  %v4781_v45 = vld [vmem:[#allocation8 + $0x14] ss:$8 sps:$4 sm:$0xff]  }
 0x191   :  { %2843 = vmatpush1.bf16.msra.mxu1 %v4611_v48  ;;  %v4784_v48 = vld [vmem:[#allocation8 + $0x24] ss:$8 sps:$4 sm:$0xff]  }
 0x192   :  { %2679 = vmatpush1.bf16.msra.mxu0 %v4608_v47  ;;  %2844 = vmatprep.subr.bf16.mxu1 %v4619_v23  ;;  %v4779_v47 = vld [vmem:[#allocation8 + $0x10] ss:$8 sps:$4 sm:$0xff]  }
 0x193   :  { %2680 = vmatprep.subr.bf16.mxu0 %v4616_v49  ;;  %v5256_v55 = vpop.f32.mrb[0].mxu1  ;;  %v4686_v49 = vld [vmem:[#allocation5 + $0x848] ss:$16 sps:$4 sm:$0xff]   ;;  %v4691_v23 = vld [vmem:[#allocation5 + $0x86c] ss:$16 sps:$4 sm:$0xff]  }
 0x194   :  { %v5258_v58 = vpop.f32.mrb[1].mxu1 }
 0x195   :  { %v2503_v59 = vpop.f32.mrb[2].mxu1  ;;  %2845 = vmatpush1.bf16.msra.mxu1 %v4617_v51  ;;  %v4689_v51 = vld [vmem:[#allocation5 + $0x868] ss:$16 sps:$4 sm:$0xff]  }
 0x196   :  { %2681 = vmatpush1.bf16.msra.mxu0 %v4614_v50  ;;  %v2504_v62 = vpop.f32.mrb[3].mxu1  ;;  %2846 = vmatprep.subr.bf16.mxu1 %v4625_v54  ;;  %v4787_v50 = vld [vmem:[#allocation8 + $0x34] ss:$8 sps:$4 sm:$0xff]   ;;  %v4790_v54 = vld [vmem:[#allocation8 + $0x44] ss:$8 sps:$4 sm:$0xff]  }
 0x197   :  { %2682 = vmatprep.subr.bf16.mxu0 %v4622_v53  ;;  %v4785_v53 = vld [vmem:[#allocation8 + $0x30] ss:$8 sps:$4 sm:$0xff]   ;;  %v4788_v59 = vld [vmem:[#allocation8 + $0x40] ss:$8 sps:$4 sm:$0xff]  }
 0x198   :  { %v4700_v62 = vld [vmem:[#allocation5 + $0x8cc] ss:$16 sps:$4 sm:$0xff]  }
 0x199   :  { %2847 = vmatpush1.bf16.msra.mxu1 %v4623_v57  ;;  %v4697_v57 = vld [vmem:[#allocation5 + $0x8ac] ss:$16 sps:$4 sm:$0xff]  }
 0x19a   :  { %2683 = vmatpush1.bf16.msra.mxu0 %v4620_v56  ;;  %2848 = vmatprep.subr.bf16.mxu1 %v4631_v61  ;;  %v4692_v56 = vld [vmem:[#allocation5 + $0x888] ss:$16 sps:$4 sm:$0xff]  }
 0x19b   :  { %2684 = vmatprep.subr.bf16.mxu0 %v4628_v60  ;;  %v4793_v60 = vld [vmem:[#allocation8 + $0x54] ss:$8 sps:$4 sm:$0xff]  }
 0x19c   :  { %v4695_v61 = vld [vmem:[#allocation5 + $0x8a8] ss:$16 sps:$4 sm:$0xff]  }
 0x19d   :  { %2849 = vmatpush1.bf16.msra.mxu1 %v4629_v0  ;;  %v4796_v0 = vld [vmem:[#allocation8 + $0x64] ss:$8 sps:$4 sm:$0xff]  }
 0x19e   :  { %2685 = vmatpush1.bf16.msra.mxu0 %v4626_v63  ;;  %2850 = vmatprep.subr.bf16.mxu1 %v4637_v2  ;;  %v4791_v63 = vld [vmem:[#allocation8 + $0x50] ss:$8 sps:$4 sm:$0xff]  }
 0x19f   :  { %2686 = vmatprep.subr.bf16.mxu0 %v4634_v1  ;;  %v4698_v1 = vld [vmem:[#allocation5 + $0x8c8] ss:$16 sps:$4 sm:$0xff]   ;;  %v4703_v2 = vld [vmem:[#allocation5 + $0x8ec] ss:$16 sps:$4 sm:$0xff]  }
 0x1a1   :  { %2851 = vmatpush1.bf16.msra.mxu1 %v4635_v4  ;;  %v4799_v4 = vld [vmem:[#allocation8 + $0x74] ss:$8 sps:$4 sm:$0xff]  }
 0x1a2   :  { %2687 = vmatpush1.bf16.msra.mxu0 %v4632_v3  ;;  %2852 = vmatprep.subr.bf16.mxu1 %v4643_v6  ;;  %v4794_v3 = vld [vmem:[#allocation8 + $0x60] ss:$8 sps:$4 sm:$0xff]  }
 0x1a3   :  { %2688 = vmatprep.subr.bf16.mxu0 %v4640_v5  ;;  %v4701_v5 = vld [vmem:[#allocation5 + $0x8e8] ss:$16 sps:$4 sm:$0xff]   ;;  %v4706_v6 = vld [vmem:[#allocation5 + $0x90c] ss:$16 sps:$4 sm:$0xff]  }
 0x1a5   :  { %2853 = vmatpush1.bf16.msra.mxu1 %v4641_v9  ;;  %v4802_v9 = vld [vmem:[#allocation8 + $0x84] ss:$8 sps:$4 sm:$0xff]  }
 0x1a6   :  { %2689 = vmatpush1.bf16.msra.mxu0 %v4638_v7  ;;  %2854 = vmatprep.subr.bf16.mxu1 %v4649_v12  ;;  %v4797_v7 = vld [vmem:[#allocation8 + $0x70] ss:$8 sps:$4 sm:$0xff]  }
 0x1a7   :  { %2690 = vmatprep.subr.bf16.mxu0 %v4646_v10  ;;  %v4704_v10 = vld [vmem:[#allocation5 + $0x908] ss:$16 sps:$4 sm:$0xff]   ;;  %v4709_v12 = vld [vmem:[#allocation5 + $0x92c] ss:$16 sps:$4 sm:$0xff]  }
 0x1a9   :  { %2855 = vmatpush1.bf16.msra.mxu1 %v4647_v14  ;;  %v4805_v14 = vld [vmem:[#allocation8 + $0x94] ss:$8 sps:$4 sm:$0xff]  }
 0x1aa   :  { %2691 = vmatpush1.bf16.msra.mxu0 %v4644_v13  ;;  %2856 = vmatprep.subr.bf16.mxu1 %v4655_v17  ;;  %v4800_v13 = vld [vmem:[#allocation8 + $0x80] ss:$8 sps:$4 sm:$0xff]  }
 0x1ab   :  { %2692 = vmatprep.subr.bf16.mxu0 %v4652_v15  ;;  %v4707_v15 = vld [vmem:[#allocation5 + $0x928] ss:$16 sps:$4 sm:$0xff]   ;;  %v4712_v17 = vld [vmem:[#allocation5 + $0x94c] ss:$16 sps:$4 sm:$0xff]  }
 0x1ad   :  { %2857 = vmatpush1.bf16.msra.mxu1 %v4653_v19  ;;  %v4808_v19 = vld [vmem:[#allocation8 + $0xa4] ss:$8 sps:$4 sm:$0xff]  }
 0x1ae   :  { %2693 = vmatpush1.bf16.msra.mxu0 %v4650_v18  ;;  %2858 = vmatprep.subr.bf16.mxu1 %v4661_v21  ;;  %v4803_v18 = vld [vmem:[#allocation8 + $0x90] ss:$8 sps:$4 sm:$0xff]  }
 0x1af   :  { %2694 = vmatprep.subr.bf16.mxu0 %v4658_v20  ;;  %v4710_v20 = vld [vmem:[#allocation5 + $0x948] ss:$16 sps:$4 sm:$0xff]   ;;  %v4715_v21 = vld [vmem:[#allocation5 + $0x96c] ss:$16 sps:$4 sm:$0xff]  }
 0x1b1   :  { %2859 = vmatpush1.bf16.msra.mxu1 %v4659_v24  ;;  %v4811_v24 = vld [vmem:[#allocation8 + $0xb4] ss:$8 sps:$4 sm:$0xff]  }
 0x1b2   :  { %2695 = vmatpush1.bf16.msra.mxu0 %v4656_v22  ;;  %2860 = vmatprep.subr.bf16.mxu1 %v4667_v27  ;;  %v4806_v22 = vld [vmem:[#allocation8 + $0xa0] ss:$8 sps:$4 sm:$0xff]  }
 0x1b3   :  { %2696 = vmatprep.subr.bf16.mxu0 %v4664_v26  ;;  %v4713_v26 = vld [vmem:[#allocation5 + $0x968] ss:$16 sps:$4 sm:$0xff]   ;;  %v4718_v27 = vld [vmem:[#allocation5 + $0x98c] ss:$16 sps:$4 sm:$0xff]  }
 0x1b5   :  { %2861 = vmatpush1.bf16.msra.mxu1 %v4665_v29  ;;  %v4814_v29 = vld [vmem:[#allocation8 + $0xc4] ss:$8 sps:$4 sm:$0xff]  }
 0x1b6   :  { %2697 = vmatpush1.bf16.msra.mxu0 %v4662_v28  ;;  %2862 = vmatprep.subr.bf16.mxu1 %v4673_v31  ;;  %v4809_v28 = vld [vmem:[#allocation8 + $0xb0] ss:$8 sps:$4 sm:$0xff]  }
 0x1b7   :  { %2698 = vmatprep.subr.bf16.mxu0 %v4670_v30  ;;  %v4716_v30 = vld [vmem:[#allocation5 + $0x988] ss:$16 sps:$4 sm:$0xff]   ;;  %v4721_v31 = vld [vmem:[#allocation5 + $0x9ac] ss:$16 sps:$4 sm:$0xff]  }
 0x1b9   :  { %2863 = vmatpush1.bf16.msra.mxu1 %v4671_v33  ;;  %v4817_v33 = vld [vmem:[#allocation8 + $0xd4] ss:$8 sps:$4 sm:$0xff]  }
 0x1ba   :  { %2699 = vmatpush1.bf16.msra.mxu0 %v4668_v32  ;;  %2864 = vmatprep.subr.bf16.mxu1 %v4679_v52  ;;  %v4812_v32 = vld [vmem:[#allocation8 + $0xc0] ss:$8 sps:$4 sm:$0xff]  }
 0x1bb   :  { %2700 = vmatprep.subr.bf16.mxu0 %v4676_v35  ;;  %v4719_v35 = vld [vmem:[#allocation5 + $0x9a8] ss:$16 sps:$4 sm:$0xff]   ;;  %v4724_v52 = vld [vmem:[#allocation5 + $0x9cc] ss:$16 sps:$4 sm:$0xff]  }
 0x1bd   :  { %2865 = vmatpush1.bf16.msra.mxu1 %v4677_v37  ;;  %v4722_v37 = vld [vmem:[#allocation5 + $0x9c8] ss:$16 sps:$4 sm:$0xff]  }
 0x1be   :  { %2701 = vmatpush1.bf16.msra.mxu0 %v4674_v11  ;;  %2875 = vmatprep.subr.bf16.mxu1 %v4682_v40  ;;  %v4815_v11 = vld [vmem:[#allocation8 + $0xd0] ss:$8 sps:$4 sm:$0xff]   ;;  %v4725_v40 = vld [vmem:[#allocation5 + $0x9e8] ss:$16 sps:$4 sm:$0xff]  }
 0x1bf   :  { %3361 = vmatprep.subr.bf16.mxu0 %v4778_v44  ;;  %v4731_v44 = vld [vmem:[#allocation5 + $0xa28] ss:$16 sps:$4 sm:$0xff]  }
 0x1c0   :  { %2867 = vmatmul.mubr.bf16.vlgmr.msra.gmra.mrb[4].mxu1 %v5240_v25  ;;  %v4782_v25 = vld [vmem:[#allocation8 + $0x20] ss:$8 sps:$4 sm:$0xff]  }
 0x1c1   :  { %2703 = vmatmul.mubr.bf16.vlgmr.msra.gmra.mrb[0].mxu0 %v5260_v41  ;;  %2876 = vmatpush1.bf16.msra.mxu1 %v4680_v36  ;;  %v4730_v36 = vld [vmem:[#allocation5 + $0xa0c] ss:$16 sps:$4 sm:$0xff]  }
 0x1c2   :  { %2907 = vmatprep.mubr.bf16.mxu1 %v5242_v8  ;;  %2877 = vmatprep.subr.bf16.mxu1 %v4685_v42  ;;  %v4694_v8 = vld [vmem:[#allocation5 + $0x88c] ss:$16 sps:$4 sm:$0xff]   ;;  %v4728_v42 = vld [vmem:[#allocation5 + $0xa08] ss:$16 sps:$4 sm:$0xff]  }
 0x1c3   :  { %3362 = vmatpush1.bf16.msra.mxu0 %v4776_v43  ;;  %v4733_v43 = vld [vmem:[#allocation5 + $0xa2c] ss:$16 sps:$4 sm:$0xff]  }
 0x1c4   :  { %3363 = vmatprep.subr.bf16.mxu0 %v4781_v45  ;;  %v4734_v45 = vld [vmem:[#allocation5 + $0xa48] ss:$16 sps:$4 sm:$0xff]  }
 0x1c5   :  { %2878 = vmatpush1.bf16.msra.mxu1 %v4683_v16  ;;  %v4736_v16 = vld [vmem:[#allocation5 + $0xa4c] ss:$16 sps:$4 sm:$0xff]  }
 0x1c6   :  { %2879 = vmatprep.subr.bf16.mxu1 %v4688_v46  ;;  %v4739_v46 = vld [vmem:[#allocation5 + $0xa6c] ss:$16 sps:$4 sm:$0xff]  }
 0x1c7   :  { %3364 = vmatpush1.bf16.msra.mxu0 %v4779_v47  ;;  %v4737_v47 = vld [vmem:[#allocation5 + $0xa68] ss:$16 sps:$4 sm:$0xff]  }
 0x1c8   :  { %3365 = vmatprep.subr.bf16.mxu0 %v4784_v48  ;;  %v4742_v48 = vld [vmem:[#allocation5 + $0xa8c] ss:$16 sps:$4 sm:$0xff]  }
 0x1c9   :  { %2880 = vmatpush1.bf16.msra.mxu1 %v4686_v49  ;;  %v4740_v49 = vld [vmem:[#allocation5 + $0xa88] ss:$16 sps:$4 sm:$0xff]  }
 0x1ca   :  { %2881 = vmatprep.subr.bf16.mxu1 %v4691_v23  ;;  %v4745_v23 = vld [vmem:[#allocation5 + $0xaac] ss:$16 sps:$4 sm:$0xff]  }
 0x1cb   :  { %3366 = vmatpush1.bf16.msra.mxu0 %v4782_v25  ;;  %v4748_v25 = vld [vmem:[#allocation5 + $0xacc] ss:$16 sps:$4 sm:$0xff]  }
 0x1cc   :  { %3367 = vmatprep.subr.bf16.mxu0 %v4787_v50  ;;  %v4820_v50 = vld [vmem:[#allocation8 + $0xe4] ss:$8 sps:$4 sm:$0xff]  }
 0x1cd   :  { %2882 = vmatpush1.bf16.msra.mxu1 %v4689_v51  ;;  %v4746_v51 = vld [vmem:[#allocation5 + $0xac8] ss:$16 sps:$4 sm:$0xff]  }
 0x1ce   :  { %2883 = vmatprep.subr.bf16.mxu1 %v4694_v8  ;;  %v4751_v8 = vld [vmem:[#allocation5 + $0xaec] ss:$16 sps:$4 sm:$0xff]  }
 0x1cf   :  { %3368 = vmatpush1.bf16.msra.mxu0 %v4785_v53  ;;  %v4823_v53 = vld [vmem:[#allocation8 + $0xf4] ss:$8 sps:$4 sm:$0xff]  }
 0x1d0   :  { %3369 = vmatprep.subr.bf16.mxu0 %v4790_v54  ;;  %v4821_v54 = vld [vmem:[#allocation8 + $0xf0] ss:$8 sps:$4 sm:$0xff]  }
 0x1d1   :  { %2884 = vmatpush1.bf16.msra.mxu1 %v4692_v56  ;;  %v4749_v56 = vld [vmem:[#allocation5 + $0xae8] ss:$16 sps:$4 sm:$0xff]  }
 0x1d2   :  { %2885 = vmatprep.subr.bf16.mxu1 %v4697_v57  ;;  %v4754_v57 = vld [vmem:[#allocation5 + $0xb0c] ss:$16 sps:$4 sm:$0xff]  }
 0x1d3   :  { %3370 = vmatpush1.bf16.msra.mxu0 %v4788_v59  ;;  %v4826_v59 = vld [vmem:[#allocation8 + $0x104] ss:$8 sps:$4 sm:$0xff]  }
 0x1d4   :  { %3371 = vmatprep.subr.bf16.mxu0 %v4793_v60  ;;  %v4752_v60 = vld [vmem:[#allocation5 + $0xb08] ss:$16 sps:$4 sm:$0xff]  }
 0x1d5   :  { %2886 = vmatpush1.bf16.msra.mxu1 %v4695_v61  ;;  %v4757_v61 = vld [vmem:[#allocation5 + $0xb2c] ss:$16 sps:$4 sm:$0xff]  }
 0x1d6   :  { %2887 = vmatprep.subr.bf16.mxu1 %v4700_v62  ;;  %v4755_v62 = vld [vmem:[#allocation5 + $0xb28] ss:$16 sps:$4 sm:$0xff]  }
 0x1d7   :  { %3372 = vmatpush1.bf16.msra.mxu0 %v4791_v63  ;;  %v4760_v63 = vld [vmem:[#allocation5 + $0xb4c] ss:$16 sps:$4 sm:$0xff]  }
 0x1d8   :  { %3373 = vmatprep.subr.bf16.mxu0 %v4796_v0  ;;  %v4758_v0 = vld [vmem:[#allocation5 + $0xb48] ss:$16 sps:$4 sm:$0xff]  }
 0x1d9   :  { %2888 = vmatpush1.bf16.msra.mxu1 %v4698_v1  ;;  %v4763_v1 = vld [vmem:[#allocation5 + $0xb6c] ss:$16 sps:$4 sm:$0xff]  }
 0x1da   :  { %2889 = vmatprep.subr.bf16.mxu1 %v4703_v2  ;;  %v4761_v2 = vld [vmem:[#allocation5 + $0xb68] ss:$16 sps:$4 sm:$0xff]  }
 0x1db   :  { %3374 = vmatpush1.bf16.msra.mxu0 %v4794_v3  ;;  %v4766_v3 = vld [vmem:[#allocation5 + $0xb8c] ss:$16 sps:$4 sm:$0xff]  }
 0x1dc   :  { %3375 = vmatprep.subr.bf16.mxu0 %v4799_v4  ;;  %v4764_v4 = vld [vmem:[#allocation5 + $0xb88] ss:$16 sps:$4 sm:$0xff]  }
 0x1dd   :  { %2890 = vmatpush1.bf16.msra.mxu1 %v4701_v5  ;;  %v4769_v5 = vld [vmem:[#allocation5 + $0xbac] ss:$16 sps:$4 sm:$0xff]  }
 0x1de   :  { %2891 = vmatprep.subr.bf16.mxu1 %v4706_v6  ;;  %v4767_v6 = vld [vmem:[#allocation5 + $0xba8] ss:$16 sps:$4 sm:$0xff]  }
 0x1df   :  { %3376 = vmatpush1.bf16.msra.mxu0 %v4797_v7  ;;  %v4772_v7 = vld [vmem:[#allocation5 + $0xbcc] ss:$16 sps:$4 sm:$0xff]  }
 0x1e0   :  { %3377 = vmatprep.subr.bf16.mxu0 %v4802_v9  ;;  %v4770_v9 = vld [vmem:[#allocation5 + $0xbc8] ss:$16 sps:$4 sm:$0xff]  }
 0x1e1   :  { %2892 = vmatpush1.bf16.msra.mxu1 %v4704_v10  ;;  %v4775_v10 = vld [vmem:[#allocation5 + $0xbec] ss:$16 sps:$4 sm:$0xff]  }
 0x1e2   :  { %2893 = vmatprep.subr.bf16.mxu1 %v4709_v12  ;;  %v4773_v12 = vld [vmem:[#allocation5 + $0xbe8] ss:$16 sps:$4 sm:$0xff]  }
 0x1e3   :  { %3378 = vmatpush1.bf16.msra.mxu0 %v4800_v13  ;;  %v525_v13 = vlaneseq }
 0x1e4   :  { %3379 = vmatprep.subr.bf16.mxu0 %v4805_v14 }
 0x1e5   :  { %2894 = vmatpush1.bf16.msra.mxu1 %v4707_v15  ;;  %v5268_v14 = vshrl.u32 %v525_v13, 7 }
 0x1e6   :  { %2895 = vmatprep.subr.bf16.mxu1 %v4712_v17  ;;  %v5271_v17 = vld [vmem:[#allocation7] sm:$0xf] }
 0x1e7   :  { %3380 = vmatpush1.bf16.msra.mxu0 %v4803_v18  ;;  %v527_v15 = vsub.s32 0, %v5268_v14  ;;  %v531_v18 = vsub.s32 1, %v5268_v14 }
 0x1e8   :  { %3381 = vmatprep.subr.bf16.mxu0 %v4808_v19 }
 0x1e9   :  { %2896 = vmatpush1.bf16.msra.mxu1 %v4710_v20  ;;  %v528_v19 = vrot.slane %v5271_v17, %v527_v15  ;;  %v532_v20 = vrot.slane %v5271_v17, %v531_v18 }
 0x1ea   :  { %2897 = vmatprep.subr.bf16.mxu1 %v4715_v21 }
 0x1eb   :  { %3382 = vmatpush1.bf16.msra.mxu0 %v4806_v22  ;;  %v2500_v21 = vadd.f32 %v5256_v55, %v528_v19  ;;  %v4827_v55 = vld [vmem:[#allocation8 + $0x110] ss:$8 sps:$4 sm:$0xff]  }
 0x1ec   :  { %3383 = vmatprep.subr.bf16.mxu0 %v4811_v24 }
 0x1ed   :  { %2898 = vmatpush1.bf16.msra.mxu1 %v4713_v26 }
 0x1ee   :  { %2899 = vmatprep.subr.bf16.mxu1 %v4718_v27 }
 0x1ef   :  { %3384 = vmatpush1.bf16.msra.mxu0 %v4809_v28 }
 0x1f0   :  { %3385 = vmatprep.subr.bf16.mxu0 %v4814_v29 }
 0x1f1   :  { %2900 = vmatpush1.bf16.msra.mxu1 %v4716_v30 }
 0x1f2   :  { %2901 = vmatprep.subr.bf16.mxu1 %v4721_v31 }
 0x1f3   :  { %3386 = vmatpush1.bf16.msra.mxu0 %v4812_v32 }
 0x1f4   :  { %3387 = vmatprep.subr.bf16.mxu0 %v4817_v33  ;;  %v4824_v33 = vld [vmem:[#allocation8 + $0x100] ss:$8 sps:$4 sm:$0xff]  }
 0x1f5   :  { %2902 = vmatpush1.bf16.msra.mxu1 %v4719_v35 }
 0x1f6   :  { %2903 = vmatprep.subr.bf16.mxu1 %v4724_v52  ;;  %v4829_v52 = vld [vmem:[#allocation8 + $0x114] ss:$8 sps:$4 sm:$0xff]  }
 0x1f7   :  { %3388 = vmatpush1.bf16.msra.mxu0 %v4815_v11  ;;  %v4872_v11 = vld [vmem:[#allocation11 + $0x40] sm:$0xff]  }
 0x1f8   :  { %3389 = vmatprep.subr.bf16.mxu0 %v4820_v50  ;;  %v4839_v50 = vld [vmem:[#allocation8 + $0x150] ss:$8 sps:$4 sm:$0xff]  }
 0x1f9   :  { %2904 = vmatpush1.bf16.msra.mxu1 %v4722_v37  ;;  %v4873_v37 = vld [vmem:[#allocation11] sm:$0xff]  }
 0x1fa   :  { %2905 = vmatprep.subr.bf16.mxu1 %v4727_v39  ;;  %v4874_v39 = vld [vmem:[#allocation11 + $0x48] sm:$0xff]  }
 0x1fd   :  { %2906 = vmatpush1.bf16.msra.mxu1 %v4725_v40  ;;  %v4875_v40 = vld [vmem:[#allocation11 + $0x8] sm:$0xff]  }
 0x1fe   :  { %2916 = vmatprep.subr.bf16.mxu1 %v4730_v36  ;;  %v4876_v36 = vld [vmem:[#allocation11 + $0x50] sm:$0xff]  }
 0x200   :  { %2908 = vmatmul.mubr.bf16.vlgmr.msra.gmra.mrb[4].mxu1 %v5248_v34  ;;  %v4743_v34 = vld [vmem:[#allocation5 + $0xaa8] ss:$16 sps:$4 sm:$0xff]  }
 0x201   :  { %2917 = vmatpush1.bf16.msra.mxu1 %v4728_v42  ;;  %2948 = vmatprep.mubr.bf16.mxu1 %v5250_v38  ;;  %v4818_v38 = vld [vmem:[#allocation8 + $0xe0] ss:$8 sps:$4 sm:$0xff]  }
 0x202   :  { %2918 = vmatprep.subr.bf16.mxu1 %v4733_v43  ;;  %3390 = vmatpush1.bf16.msra.mxu0 %v4818_v38  ;;  %v4830_v42 = vld [vmem:[#allocation8 + $0x120] ss:$8 sps:$4 sm:$0xff]   ;;  %v4835_v43 = vld [vmem:[#allocation8 + $0x134] ss:$8 sps:$4 sm:$0xff]   ;;  %v4844_v38 = vld [vmem:[#allocation8 + $0x164] ss:$8 sps:$4 sm:$0xff]  }
 0x203   :  { %3391 = vmatprep.subr.bf16.mxu0 %v4823_v53  ;;  %v4847_v53 = vld [vmem:[#allocation8 + $0x174] ss:$8 sps:$4 sm:$0xff]  }
 0x205   :  { %2919 = vmatpush1.bf16.msra.mxu1 %v4731_v44  ;;  %v4877_v44 = vld [vmem:[#allocation11 + $0x10] sm:$0xff]  }
 0x206   :  { %2920 = vmatprep.subr.bf16.mxu1 %v4736_v16  ;;  %3392 = vmatpush1.bf16.msra.mxu0 %v4821_v54  ;;  %v4878_v16 = vld [vmem:[#allocation11 + $0x58] sm:$0xff]  }
 0x207   :  { %3402 = vmatprep.subr.bf16.mxu0 %v4826_v59  ;;  %v4845_v54 = vld [vmem:[#allocation8 + $0x170] ss:$8 sps:$4 sm:$0xff]   ;;  %v4853_v59 = vld [vmem:[#allocation8 + $0x194] ss:$8 sps:$4 sm:$0xff]  }
 0x209   :  { %2921 = vmatpush1.bf16.msra.mxu1 %v4734_v45  ;;  %v4833_v45 = vld [vmem:[#allocation8 + $0x130] ss:$8 sps:$4 sm:$0xff]  }
 0x20a   :  { %2922 = vmatprep.subr.bf16.mxu1 %v4739_v46  ;;  %v4838_v46 = vld [vmem:[#allocation8 + $0x144] ss:$8 sps:$4 sm:$0xff]  }
 0x20d   :  { %2923 = vmatpush1.bf16.msra.mxu1 %v4737_v47  ;;  %v4879_v47 = vld [vmem:[#allocation11 + $0x18] sm:$0xff]  }
 0x20e   :  { %2924 = vmatprep.subr.bf16.mxu1 %v4742_v48  ;;  %v4880_v48 = vld [vmem:[#allocation11 + $0x60] sm:$0xff]  }
 0x211   :  { %2925 = vmatpush1.bf16.msra.mxu1 %v4740_v49  ;;  %v4836_v49 = vld [vmem:[#allocation8 + $0x140] ss:$8 sps:$4 sm:$0xff]  }
 0x212   :  { %2926 = vmatprep.subr.bf16.mxu1 %v4745_v23  ;;  %v4841_v23 = vld [vmem:[#allocation8 + $0x154] ss:$8 sps:$4 sm:$0xff]  }
 0x215   :  { %2927 = vmatpush1.bf16.msra.mxu1 %v4743_v34  ;;  %v4881_v34 = vld [vmem:[#allocation11 + $0x20] sm:$0xff]  }
 0x216   :  { %2928 = vmatprep.subr.bf16.mxu1 %v4748_v25  ;;  %v4882_v25 = vld [vmem:[#allocation11 + $0x68] sm:$0xff]  }
 0x219   :  { %2929 = vmatpush1.bf16.msra.mxu1 %v4746_v51  ;;  %v4883_v51 = vld [vmem:[#allocation11 + $0x28] sm:$0xff]  }
 0x21a   :  { %2930 = vmatprep.subr.bf16.mxu1 %v4751_v8  ;;  %v4842_v8 = vld [vmem:[#allocation8 + $0x160] ss:$8 sps:$4 sm:$0xff]  }
 0x21d   :  { %2931 = vmatpush1.bf16.msra.mxu1 %v4749_v56  ;;  %v4850_v56 = vld [vmem:[#allocation8 + $0x184] ss:$8 sps:$4 sm:$0xff]  }
 0x21e   :  { %2932 = vmatprep.subr.bf16.mxu1 %v4754_v57  ;;  %v4848_v57 = vld [vmem:[#allocation8 + $0x180] ss:$8 sps:$4 sm:$0xff]  }
 0x221   :  { %2933 = vmatpush1.bf16.msra.mxu1 %v4752_v60  ;;  %v4851_v60 = vld [vmem:[#allocation8 + $0x190] ss:$8 sps:$4 sm:$0xff]  }
 0x222   :  { %2934 = vmatprep.subr.bf16.mxu1 %v4757_v61  ;;  %v4856_v61 = vld [vmem:[#allocation8 + $0x1a4] ss:$8 sps:$4 sm:$0xff]  }
 0x225   :  { %2935 = vmatpush1.bf16.msra.mxu1 %v4755_v62  ;;  %v4854_v62 = vld [vmem:[#allocation8 + $0x1a0] ss:$8 sps:$4 sm:$0xff]  }
 0x226   :  { %2936 = vmatprep.subr.bf16.mxu1 %v4760_v63  ;;  %v4859_v63 = vld [vmem:[#allocation8 + $0x1b4] ss:$8 sps:$4 sm:$0xff]  }
 0x229   :  { %2937 = vmatpush1.bf16.msra.mxu1 %v4758_v0  ;;  %v4857_v0 = vld [vmem:[#allocation8 + $0x1b0] ss:$8 sps:$4 sm:$0xff]  }
 0x22a   :  { %2938 = vmatprep.subr.bf16.mxu1 %v4763_v1  ;;  %v4862_v1 = vld [vmem:[#allocation8 + $0x1c4] ss:$8 sps:$4 sm:$0xff]  }
 0x22d   :  { %2939 = vmatpush1.bf16.msra.mxu1 %v4761_v2  ;;  %v4860_v2 = vld [vmem:[#allocation8 + $0x1c0] ss:$8 sps:$4 sm:$0xff]  }
 0x22e   :  { %2940 = vmatprep.subr.bf16.mxu1 %v4766_v3  ;;  %v4865_v3 = vld [vmem:[#allocation8 + $0x1d4] ss:$8 sps:$4 sm:$0xff]  }
 0x231   :  { %2941 = vmatpush1.bf16.msra.mxu1 %v4764_v4  ;;  %v4863_v4 = vld [vmem:[#allocation8 + $0x1d0] ss:$8 sps:$4 sm:$0xff]  }
 0x232   :  { %2942 = vmatprep.subr.bf16.mxu1 %v4769_v5  ;;  %v4868_v5 = vld [vmem:[#allocation8 + $0x1e4] ss:$8 sps:$4 sm:$0xff]  }
 0x235   :  { %2943 = vmatpush1.bf16.msra.mxu1 %v4767_v6  ;;  %v4866_v6 = vld [vmem:[#allocation8 + $0x1e0] ss:$8 sps:$4 sm:$0xff]  }
 0x236   :  { %2944 = vmatprep.subr.bf16.mxu1 %v4772_v7  ;;  %v4871_v7 = vld [vmem:[#allocation8 + $0x1f4] ss:$8 sps:$4 sm:$0xff]  }
 0x239   :  { %2945 = vmatpush1.bf16.msra.mxu1 %v4770_v9  ;;  %v4869_v9 = vld [vmem:[#allocation8 + $0x1f0] ss:$8 sps:$4 sm:$0xff]  }
 0x23a   :  { %2946 = vmatprep.subr.bf16.mxu1 %v4775_v10  ;;  %v535_v10 = vsub.s32 2, %v5268_v14 }
 0x23c   :  { %v536_v13 = vrot.slane %v5271_v17, %v535_v10 }
 0x23d   :  { %2947 = vmatpush1.bf16.msra.mxu1 %v4773_v12  ;;  %v539_v12 = vsub.s32 3, %v5268_v14 }
 0x23e   :  { %4116 = vmatprep.subr.bf16.mxu1 %v4872_v11 }
 0x23f   :  { %v540_v19 = vrot.slane %v5271_v17, %v539_v12  ;;  %v3029_v17 = vld [vmem:[#allocation10] sm:$0x3] }
 0x240   :  { %2949 = vmatmul.mubr.bf16.vlgmr.msra.gmra.mrb[4].mxu1 %v5260_v41  ;;  %v2502_v41 = vadd.f32 %v5258_v58, %v532_v20  ;;  %v4832_v58 = vld [vmem:[#allocation8 + $0x124] ss:$8 sps:$4 sm:$0xff]   ;;  %v3038_v11 = vrot.slane %v3029_v17, %v531_v18 }
 0x241   :  { %4117 = vmatpush3.bf16.msra.mxu1 %v4873_v37 }
 0x242   :  { %4118 = vmatprep.subr.bf16.mxu1 %v4874_v39 }
 0x245   :  { %4119 = vmatpush3.bf16.msra.mxu1 %v4875_v40 }
 0x246   :  { %4120 = vmatprep.subr.bf16.mxu1 %v4876_v36 }
 0x249   :  { %4121 = vmatpush3.bf16.msra.mxu1 %v4877_v44 }
 0x24a   :  { %4122 = vmatprep.subr.bf16.mxu1 %v4878_v16 }
 0x24d   :  { %4123 = vmatpush3.bf16.msra.mxu1 %v4879_v47  ;;  %v4099_v47 = vld [vmem:[#allocation13] ss:$0 sm:$0xff] }
 0x24e   :  { %4124 = vmatprep.subr.bf16.mxu1 %v4880_v48 }
 0x251   :  { %4125 = vmatpush3.bf16.msra.mxu1 %v4881_v34 }
 0x252   :  { %4126 = vmatprep.subr.bf16.mxu1 %v4882_v25 }
 0x255   :  { %4127 = vmatpush3.bf16.msra.mxu1 %v4883_v51 }
 0x294   :  { %v2704_v22 = vpop.f32.mrb[0].mxu0 }
 0x295   :  { %v4139_v24 = vadd.f32 %v2704_v22, %v2500_v21  ;;  %v2706_v26 = vpop.f32.mrb[1].mxu0 }
 0x296   :  { %v4141_v27 = vadd.f32 %v2706_v26, %v2502_v41  ;;  %v2708_v28 = vpop.f32.mrb[2].mxu0 }
 0x297   :  { %v2957_v29 = vmax.f32 %v4139_v24, 0.0  ;;  %v2709_v30 = vpop.f32.mrb[3].mxu0 }
 0x298   :  { %v2958_v31 = vmax.f32 %v4141_v27, 0.0 }
 0x299   :  { %v2961_v35 = vpack.c.bf16 %v2957_v29, %v2957_v29 }
 0x29a   :  { %v2962_v32 = vpack.c.bf16 %v2958_v31, %v2958_v31  ;;  %v4884_v31 = vld [vmem:[#allocation11 + $0x70] sm:$0xff]  }
 0x29b   :  { %4128 = vmatprep.subr.bf16.mxu1 %v4884_v31 }
 0x29c   :  { %3393 = vmatprep.mubr.bf16.mxu0 %v2962_v32  ;;  %v4885_v32 = vld [vmem:[#allocation11 + $0x30] sm:$0xff]  }
 0x29d   :  { %3394 = vmatmul.mubr.bf16.vlgmr.msra.gmra.mrb[4].mxu0 %v2961_v35  ;;  %4129 = vmatpush3.bf16.msra.mxu1 %v4885_v32  ;;  %v4887_v35 = vld [vmem:[#allocation11 + $0x38] sm:$0xff]  }
 0x29e   :  { %3403 = vmatpush1.bf16.msra.mxu0 %v4824_v33  ;;  %v4886_v33 = vld [vmem:[#allocation11 + $0x78] sm:$0xff]  }
 0x29f   :  { %3404 = vmatprep.subr.bf16.mxu0 %v4829_v52  ;;  %4130 = vmatprep.subr.bf16.mxu1 %v4886_v33  ;;  %v3034_v52 = vrot.slane %v3029_v17, %v527_v15 }
 0x2a1   :  { %4131 = vmatpush3.bf16.msra.mxu1 %v4887_v35 }
 0x2a2   :  { %3405 = vmatpush1.bf16.msra.mxu0 %v4827_v55 }
 0x2a3   :  { %3406 = vmatprep.subr.bf16.mxu0 %v4832_v58 }
 0x2a6   :  { %3407 = vmatpush1.bf16.msra.mxu0 %v4830_v42 }
 0x2a7   :  { %3408 = vmatprep.subr.bf16.mxu0 %v4835_v43 }
 0x2aa   :  { %3409 = vmatpush1.bf16.msra.mxu0 %v4833_v45 }
 0x2ab   :  { %3410 = vmatprep.subr.bf16.mxu0 %v4838_v46 }
 0x2ae   :  { %3411 = vmatpush1.bf16.msra.mxu0 %v4836_v49 }
 0x2af   :  { %3412 = vmatprep.subr.bf16.mxu0 %v4841_v23 }
 0x2b2   :  { %3413 = vmatpush1.bf16.msra.mxu0 %v4839_v50 }
 0x2b3   :  { %3414 = vmatprep.subr.bf16.mxu0 %v4844_v38 }
 0x2b6   :  { %3415 = vmatpush1.bf16.msra.mxu0 %v4842_v8 }
 0x2b7   :  { %3416 = vmatprep.subr.bf16.mxu0 %v4847_v53 }
 0x2ba   :  { %3417 = vmatpush1.bf16.msra.mxu0 %v4845_v54 }
 0x2bb   :  { %3418 = vmatprep.subr.bf16.mxu0 %v4850_v56 }
 0x2be   :  { %3419 = vmatpush1.bf16.msra.mxu0 %v4848_v57 }
 0x2bf   :  { %3420 = vmatprep.subr.bf16.mxu0 %v4853_v59 }
 0x2c2   :  { %3421 = vmatpush1.bf16.msra.mxu0 %v4851_v60 }
 0x2c3   :  { %3422 = vmatprep.subr.bf16.mxu0 %v4856_v61 }
 0x2c6   :  { %3423 = vmatpush1.bf16.msra.mxu0 %v4854_v62 }
 0x2c7   :  { %3424 = vmatprep.subr.bf16.mxu0 %v4859_v63 }
 0x2ca   :  { %3425 = vmatpush1.bf16.msra.mxu0 %v4857_v0 }
 0x2cb   :  { %3426 = vmatprep.subr.bf16.mxu0 %v4862_v1 }
 0x2ce   :  { %3427 = vmatpush1.bf16.msra.mxu0 %v4860_v2 }
 0x2cf   :  { %3428 = vmatprep.subr.bf16.mxu0 %v4865_v3 }
 0x2d2   :  { %3429 = vmatpush1.bf16.msra.mxu0 %v4863_v4 }
 0x2d3   :  { %3430 = vmatprep.subr.bf16.mxu0 %v4868_v5 }
 0x2d6   :  { %3431 = vmatpush1.bf16.msra.mxu0 %v4866_v6 }
 0x2d7   :  { %3432 = vmatprep.subr.bf16.mxu0 %v4871_v7 }
 0x2da   :  { %3433 = vmatpush1.bf16.msra.mxu0 %v4869_v9 }
 0x313   :  { %v2950_v20 = vpop.f32.mrb[4].mxu1 }
 0x314   :  { %v4142_v21 = vadd.f32 %v2950_v20, %v536_v13  ;;  %v2952_v41 = vpop.f32.mrb[5].mxu1 }
 0x315   :  { %v4143_v22 = vadd.f32 %v2952_v41, %v540_v19  ;;  %v2954_v24 = vpop.f32.mrb[6].mxu1 }
 0x316   :  { %v2959_v26 = vmax.f32 %v4142_v21, 0.0  ;;  %v2955_v27 = vpop.f32.mrb[7].mxu1 }
 0x317   :  { %v2960_v28 = vmax.f32 %v4143_v22, 0.0 }
 0x318   :  { %v2963_v30 = vpack.c.bf16 %v2959_v26, %v2959_v26 }
 0x319   :  { %v2964_v29 = vpack.c.bf16 %v2960_v28, %v2960_v28 }
 0x31b   :  { %3434 = vmatprep.mubr.bf16.mxu0 %v2964_v29 }
 0x31c   :  { %3435 = vmatmul.mubr.bf16.vlgmr.msra.gmra.mrb[4].mxu0 %v2963_v30 }
 0x3ef   :  { %v3436_v37 = vpop.f32.mrb[4].mxu0 }
 0x3f0   :  { %v4144_v39 = vadd.f32 %v3436_v37, %v3034_v52  ;;  %v3438_v55 = vpop.f32.mrb[5].mxu0 }
 0x3f1   :  { %v4145_v58 = vadd.f32 %v3438_v55, %v3038_v11  ;;  %v3440_v40 = vpop.f32.mrb[6].mxu0 }
 0x3f2   :  { %v3443_v36 = vmax.f32 %v4144_v39, 0.0  ;;  %v3441_v42 = vpop.f32.mrb[7].mxu0 }
 0x3f3   :  { %v3444_v43 = vmax.f32 %v4145_v58, 0.0 }
 0x3f4   :  { %v3445_v16 = vpack.c.bf16 %v3443_v36, %v3443_v36 }
 0x3f5   :  { %v3446_v44 = vpack.c.bf16 %v3444_v43, %v3444_v43 }
 0x3f7   :  { %3614 = vmatprep.mubr.bf16.mxu1 %v3446_v44 }
 0x3f8   :  { %3615 = vmatmul.mubr.bf16.vlgmr.msra.gmra.mrb[8].mxu1 %v3445_v16 }
 0x4cb   :  { %v4132_v45 = vpop.f32.mrb[8].mxu1 }
 0x4cc   :  { %v4133_v46 = vpop.f32.mrb[9].mxu1 }
 0x4cd   :  { %v4134_v48 = vadd.f32 %v4133_v46, %v4132_v45  ;;  %v4135_v15 = vpop.f32.mrb[10].mxu1 }
 0x4ce   :  { %v4136_v49 = vpop.f32.mrb[11].mxu1 }
 0x4cf   :  { %v3617_v14 = vadd.f32 %v4134_v48, %v4099_v47 }
 0x4d1   :  { %3622 = vmax.xlane.f32.xlu0 %v3617_v14 }
 0x55e   :  { %v3623_v18 = vpop.xlane.xlu0 %3622 }
 0x55f   :  { %v3624_v23 = vsub.f32 %v3617_v14, %v3623_v18 }
 0x561   :  { %v3625_v34 = vmul.f32 1.442695, %v3624_v23 }
 0x563   :  { %4888 = vpow2.f32 %v3625_v34 }
 0x56d   :  { %v4889_v25 = vpop.eup %4888 }
 0x56e   :  { %3627 = vadd.xlane.f32.xlu0 %v4889_v25 }
 0x5fb   :  { %v3628_v50 = vpop.xlane.xlu0 %3627 }
 0x5fc   :  { %4890 = vrcp.f32 %v3628_v50 }
 0x606   :  { %v4891_v38 = vpop.eup %4890 }
 0x607   :  { %v3630_v51 = vmul.f32 %v4891_v38, %v4889_v25 }
 0x609   :  { %v3631_v8 = vpack.c.bf16 %v3630_v51, %v3630_v51 }
 0x60b   :  { %3632 = vst [vmem:[#allocation14] sm:$0xf] %v3631_v8 }
 0x60c   :  { %5057 = shalt.err (!%p5054_p4)
}
 0x60d   :  { %s5058_s15 = scalar_lea.hbm %s5309_s7, 64 }
 0x60e   :  { %p5059_p5 = scmp.ne.s32.totalorder %s5309_s7, %s5058_s15  ;;  %p5062_p6 = scmp.lt.u32.totalorder %s5058_s15, %s5309_s7 }
 0x610   :  { %p5064_p7 = pnand %p5062_p6, %p5059_p5 }
 0x612   :  { %5067 = shalt.err (!%p5064_p7)
}
 0x613   :  { %3642 = dma.vmem_to_hbm [thread:$0]  %s3640_s13, 64, %s5309_s7, [#allocation4]  }
 0x614   :  { %5076 = dma.done.wait [#allocation4], 64  }
 0x615   :  { %5077 = vsyncadd [#allocation4], 4294967232 }
 0x616   :  { %3646 = vsyncpa [#allocation3], 1 }
 0x617   :  { %3647 = vsyncpa [#allocation6], 1 }
 0x618   :  { %3648 = vsyncpa [#allocation9], 1 }
 0x619   :  { %3649 = vsyncpa [#allocation12], 1 }
 0x61a   :  { %3650 = vsyncpa [#allocation4], 1 }

</bundles_post_ra>
